<compile_context>
chip_gen: v7x
topology: tpu7x:2x2x1
jax: 0.10.0
libtpu: 0.0.40
codegen_flags: <defaults>
</compile_context>

<pallas_src>
import jax
import jax.numpy as jnp
from jax.experimental import pallas as pl
from jax.experimental.pallas import tpu as pltpu


def _pick_seq_tile(S, TB, H, itemsize, block_bytes):
    """Largest power-of-two, multiple-of-8 sequence tile that divides S and fits budget."""
    for ts in (2048, 1024, 512, 256, 128, 64, 32, 16, 8):
        if ts <= S and S % ts == 0 and TB * ts * H * itemsize <= block_bytes:
            return ts
    return S  # odd / tiny sequence: take it whole (block == full dim is allowed)


def _make_kernel(TB, TS):
    def kernel(minv_ref, maxv_ref,                       # scalar prefetch (SMEM)
               x_ref, valid_ref, w1_ref, b1_ref, w2_ref, b2_ref,   # inputs (VMEM)
               out_ref,                                  # output  (VMEM)
               acc_ref):                                 # scratch (VMEM)
        bi = pl.program_id(0)
        si = pl.program_id(1)

        @pl.when(si == 0)
        def _init():
            acc_ref[...] = jnp.zeros_like(acc_ref)

        s0 = si * TS                       # global sequence offset of this tile
        tile_end = s0 + TS
        minv = minv_ref[bi]                # min valid tokens over this batch tile
        maxv = maxv_ref[bi]                # max valid tokens over this batch tile

        # Common case: every row of the batch tile is fully valid on this tile.
        @pl.when(tile_end <= minv)
        def _full_tile():
            acc_ref[...] += jnp.sum(x_ref[...].astype(jnp.float32), axis=1)

        # Boundary tile: per-row masked sum on the VPU.  The mask is built in
        # the native (sublane=TS, lane=H) layout (3D iota) so no relayout is
        # needed.
        @pl.when(jnp.logical_and(tile_end > minv, s0 < maxv))
        def _partial_tile():
            x = x_ref[...].astype(jnp.float32)                       # (TB, TS, H)
            seq = (jax.lax.broadcasted_iota(jnp.int32, x.shape, 1) + s0
                   ).astype(jnp.float32)
            mask = seq < valid_ref[...][:, :, None]                  # (TB,1,1) bcast
            acc_ref[...] += jnp.sum(jnp.where(mask, x, 0.0), axis=1)

        # s0 >= maxv: tile is entirely padding for every row -> no compute.

        @pl.when(si == pl.num_programs(1) - 1)
        def _finalize():
            # Single divide at the very end (not per sequence chunk).
            # TODO(synk): valid == 0 (fully padded row) divides by zero, matching
            # torch.mean of an empty slice (NaN); clamp here if a guard is desired.
            pooled = acc_ref[...] / valid_ref[...]                   # (TB, H)
            h = jnp.dot(pooled, w1_ref[...].astype(jnp.float32),
                        preferred_element_type=jnp.float32) + b1_ref[...]
            h = jnp.maximum(h, 0.0)
            y = jnp.dot(h, w2_ref[...].astype(jnp.float32),
                        preferred_element_type=jnp.float32) + b2_ref[...]
            out_ref[...] = y.astype(out_ref.dtype)

    return kernel


def classification_forward(x, pad_len, w1, b1, w2, b2, *,
                           x_block_bytes=4 * 1024 * 1024):
    """x: (B, S, H), pad_len: (B,) int32. Returns (B, num_classes) float32.

    Works for f32 or bf16 activations (bf16 halves HBM traffic; accumulation is f32).
    Weights are (in_features, out_features), i.e. transposed vs. nn.Linear.
    """
    B, S, H = x.shape
    D = w1.shape[1]
    C = w2.shape[1]
    itemsize = jnp.dtype(x.dtype).itemsize

    # Batch tile: multiple of 8 (sublane alignment for the small 2-D operands),
    # else the whole batch.
    TB = 8 if B % 8 == 0 else B
    TS = _pick_seq_tile(S, TB, H, itemsize, x_block_bytes)
    nbt = B // TB

    # Per-row valid token counts (f32, VMEM) and per-batch-tile min/max (i32, SMEM).
    valid_i = (S - pad_len).astype(jnp.int32)                    # (B,)
    valid = valid_i.astype(jnp.float32).reshape(B, 1)
    minv = jnp.min(valid_i.reshape(nbt, TB), axis=1)             # (nbt,)
    maxv = jnp.max(valid_i.reshape(nbt, TB), axis=1)             # (nbt,)

    b1_2d = b1.reshape(1, D).astype(jnp.float32)
    b2_2d = b2.reshape(1, C).astype(jnp.float32)

    grid = (nbt, S // TS)
    kernel = _make_kernel(TB, TS)

    cost = pl.CostEstimate(
        flops=2 * B * S * H + 2 * B * H * D + 2 * B * D * C,
        transcendentals=0,
        bytes_accessed=(x.size * itemsize
                        + (H * D + D + D * C + C) * 4
                        + B * (H + 1) * 4
                        + B * C * 4),
    )

    return pl.pallas_call(
        kernel,
        out_shape=jax.ShapeDtypeStruct((B, C), jnp.float32),
        grid_spec=pltpu.PrefetchScalarGridSpec(
            num_scalar_prefetch=2,
            grid=grid,
            in_specs=[
                # Activations: tiled over (batch, seq); pipelined / double-buffered.
                pl.BlockSpec((TB, TS, H), lambda bi, si, mn, mx: (bi, si, 0)),
                # Per-batch valid-token counts (tiny).
                pl.BlockSpec((TB, 1), lambda bi, si, mn, mx: (bi, 0)),
                # Weights / biases: constant block index -> DMA'd once, stay resident.
                pl.BlockSpec((H, D), lambda bi, si, mn, mx: (0, 0)),
                pl.BlockSpec((1, D), lambda bi, si, mn, mx: (0, 0)),
                pl.BlockSpec((D, C), lambda bi, si, mn, mx: (0, 0)),
                pl.BlockSpec((1, C), lambda bi, si, mn, mx: (0, 0)),
            ],
            out_specs=pl.BlockSpec((TB, C), lambda bi, si, mn, mx: (bi, 0)),
            scratch_shapes=[pltpu.VMEM((TB, H), jnp.float32)],
        ),
        compiler_params=pltpu.CompilerParams(
            # batch tiles parallel (2 TCs on v7x), sequence is the reduction.
            dimension_semantics=("parallel", "arbitrary"),
            vmem_limit_bytes=48 * 1024 * 1024,
        ),
        cost_estimate=cost,
    )(minv, maxv, x, valid, w1, b1_2d, w2, b2_2d)


def _reference(x, pad_len, w1, b1, w2, b2):
    B, S, H = x.shape
    valid = (S - pad_len).astype(jnp.float32)[:, None]
    mask = (jnp.arange(S, dtype=jnp.float32)[None, :] < valid).astype(jnp.float32)
    pooled = jnp.sum(x * mask[:, :, None], axis=1) / valid
    h = jnp.maximum(jnp.dot(pooled, w1, precision="highest") + b1, 0.0)
    return jnp.dot(h, w2, precision="highest") + b2


if __name__ == "__main__":
    # Small but tiling-exercising shapes consistent with the module.
    B, S, H = 16, 256, 128       # batch, seq, hidden
    D, C = 128, 8                # inner_dim, num_classes

    key = jax.random.PRNGKey(0)
    kx, k1, k2, k3, k4 = jax.random.split(key, 5)

    x = jax.random.normal(kx, (B, S, H), dtype=jnp.float32)

    # Deterministic pad lengths chosen so the run exercises all three in-kernel
    # paths at grid=(2, 4):
    #   batch tile 0 (rows 0-7): tiny padding  -> fully-valid tiles + one boundary tile
    #   batch tile 1 (rows 8-15): heavy padding -> one boundary tile + skipped tiles
    pad_len = jnp.array([0, 1, 2, 3, 5, 7, 6, 4,
                         200, 210, 220, 230, 240, 205, 215, 255], dtype=jnp.int32)

    # Deterministic parameter init (nn.Linear-style uniform ranges).
    w1 = jax.random.uniform(k1, (H, D), jnp.float32, -1.0 / H ** 0.5, 1.0 / H ** 0.5)
    b1 = jax.random.uniform(k2, (D,), jnp.float32, -1.0 / H ** 0.5, 1.0 / H ** 0.5)
    w2 = jax.random.uniform(k3, (D, C), jnp.float32, -1.0 / D ** 0.5, 1.0 / D ** 0.5)
    b2 = jax.random.uniform(k4, (C,), jnp.float32, -1.0 / D ** 0.5, 1.0 / D ** 0.5)

    # Small x_block_bytes so the demo actually exercises the multi-step
    # sequence-reduction pipeline (grid = (2, 4) at these shapes).
    out = classification_forward(x, pad_len, w1, b1, w2, b2,
                                 x_block_bytes=256 * 1024)
    out = jax.block_until_ready(out)

    ref = _reference(x, pad_len, w1, b1, w2, b2)
    assert out.shape == (B, C)
    assert jnp.allclose(out, ref, atol=1e-4, rtol=1e-4), (out, ref)

    print("KERNEL_OK")
</pallas_src>

<mosaic_0001>
module attributes {stable_mosaic.version = 11 : i64} {
  func.func @kernel(%arg0: i32, %arg1: i32, %arg2: memref<2xi32, #tpu.memory_space<smem>>, %arg3: memref<2xi32, #tpu.memory_space<smem>>, %arg4: memref<8x64x128xf32, #tpu.memory_space<vmem>>, %arg5: memref<8x1xf32, #tpu.memory_space<vmem>>, %arg6: memref<128x128xf32, #tpu.memory_space<vmem>>, %arg7: memref<1x128xf32, #tpu.memory_space<vmem>>, %arg8: memref<128x8xf32, #tpu.memory_space<vmem>>, %arg9: memref<1x8xf32, #tpu.memory_space<vmem>>, %arg10: memref<8x8xf32, #tpu.memory_space<vmem>>, %arg11: memref<8x128xf32, #tpu.memory_space<vmem>>) attributes {dimension_semantics = [#tpu.dimension_semantics<parallel>, #tpu.dimension_semantics<arbitrary>], iteration_bounds = array<i64: 2, 4>, scalar_prefetch = 2 : i64, scratch_operands = 1 : i64, tpu.core_type = #tpu.core_type<tc>, window_params = [{transform_indices = @transform_0, window_bounds = array<i64: 8, 64, 128>}, {transform_indices = @transform_1, window_bounds = array<i64: 8, 1>}, {pipeline_mode = #tpu.pipeline_mode<synchronous>, transform_indices = @transform_2, window_bounds = array<i64: 128, 128>}, {pipeline_mode = #tpu.pipeline_mode<synchronous>, transform_indices = @transform_3, window_bounds = array<i64: 1, 128>}, {pipeline_mode = #tpu.pipeline_mode<synchronous>, transform_indices = @transform_4, window_bounds = array<i64: 128, 8>}, {pipeline_mode = #tpu.pipeline_mode<synchronous>, transform_indices = @transform_5, window_bounds = array<i64: 1, 8>}, {transform_indices = @transform_6, window_bounds = array<i64: 8, 8>}]} {
    %c0_i32 = arith.constant 0 : i32
    %0 = arith.cmpi eq, %arg1, %c0_i32 : i32
    %1 = arith.extui %0 : i1 to i32
    %c0_i32_0 = arith.constant 0 : i32
    %2 = arith.cmpi ne, %1, %c0_i32_0 : i32
    scf.if %2 {
      %cst = arith.constant 0.000000e+00 : f32
      %20 = vector.broadcast %cst : f32 to vector<8x128xf32>
      %c0 = arith.constant 0 : index
      %c0_5 = arith.constant 0 : index
      %21 = vector.load %arg11[%c0, %c0_5] : memref<8x128xf32, #tpu.memory_space<vmem>>, vector<8x128xf32>
      tpu.vector_store %arg11[%c0, %c0_5], %20 {strides = array<i32>} : memref<8x128xf32, #tpu.memory_space<vmem>>, vector<8x128xf32>,
    } else {
    }
    %c64_i32 = arith.constant 64 : i32
    %3 = arith.muli %arg1, %c64_i32 : i32
    %c64_i32_1 = arith.constant 64 : i32
    %4 = arith.addi %3, %c64_i32_1 : i32
    %5 = arith.index_cast %arg0 : i32 to index
    %6 = memref.load %arg2[%5] : memref<2xi32, #tpu.memory_space<smem>>
    %7 = arith.index_cast %arg0 : i32 to index
    %8 = memref.load %arg3[%7] : memref<2xi32, #tpu.memory_space<smem>>
    %9 = arith.cmpi sle, %4, %6 : i32
    %10 = arith.extui %9 : i1 to i32
    %c0_i32_2 = arith.constant 0 : i32
    %11 = arith.cmpi ne, %10, %c0_i32_2 : i32
    scf.if %11 {
      %c0 = arith.constant 0 : index
      %c0_5 = arith.constant 0 : index
      %20 = vector.load %arg11[%c0, %c0_5] : memref<8x128xf32, #tpu.memory_space<vmem>>, vector<8x128xf32>
      %c0_6 = arith.constant 0 : index
      %c0_7 = arith.constant 0 : index
      %c0_8 = arith.constant 0 : index
      %21 = vector.load %arg4[%c0_6, %c0_7, %c0_8] : memref<8x64x128xf32, #tpu.memory_space<vmem>>, vector<8x64x128xf32>
      %cst = arith.constant dense<0.000000e+00> : vector<8x128xf32>
      %22 = vector.multi_reduction <add>, %21, %cst [1] : vector<8x64x128xf32> to vector<8x128xf32>
      %23 = arith.addf %20, %22 : vector<8x128xf32>
      %c0_9 = arith.constant 0 : index
      %c0_10 = arith.constant 0 : index
      %24 = vector.load %arg11[%c0_9, %c0_10] : memref<8x128xf32, #tpu.memory_space<vmem>>, vector<8x128xf32>
      tpu.vector_store %arg11[%c0_9, %c0_10], %23 {strides = array<i32>} : memref<8x128xf32, #tpu.memory_space<vmem>>, vector<8x128xf32>,
    } else {
    }
    %12 = arith.cmpi sgt, %4, %6 : i32
    %13 = arith.cmpi slt, %3, %8 : i32
    %14 = arith.andi %12, %13 : i1
    %15 = arith.extui %14 : i1 to i32
    %c0_i32_3 = arith.constant 0 : i32
    %16 = arith.cmpi ne, %15, %c0_i32_3 : i32
    scf.if %16 {
      %c0 = arith.constant 0 : index
      %c0_5 = arith.constant 0 : index
      %c0_6 = arith.constant 0 : index
      %20 = vector.load %arg4[%c0, %c0_5, %c0_6] : memref<8x64x128xf32, #tpu.memory_space<vmem>>, vector<8x64x128xf32>
      %21 = tpu.iota {dimensions = array<i32: 1>} : vector<8x64x128xi32>
      %22 = vector.broadcast %3 : i32 to vector<8x64x128xi32>
      %23 = arith.addi %21, %22 : vector<8x64x128xi32>
      %24 = arith.sitofp %23 : vector<8x64x128xi32> to vector<8x64x128xf32>
      %c0_7 = arith.constant 0 : index
      %c0_8 = arith.constant 0 : index
      %25 = vector.load %arg5[%c0_7, %c0_8] : memref<8x1xf32, #tpu.memory_space<vmem>>, vector<8x1xf32>
      %26 = vector.shape_cast %25 : vector<8x1xf32> to vector<8x1x1xf32>
      %27 = vector.broadcast %26 : vector<8x1x1xf32> to vector<8x64x128xf32>
      %28 = arith.cmpf olt, %24, %27 : vector<8x64x128xf32>
      %c0_9 = arith.constant 0 : index
      %c0_10 = arith.constant 0 : index
      %29 = vector.load %arg11[%c0_9, %c0_10] : memref<8x128xf32, #tpu.memory_space<vmem>>, vector<8x128xf32>
      %cst = arith.constant 0.000000e+00 : f32
      %30 = vector.broadcast %cst : f32 to vector<8x64x128xf32>
      %31 = arith.select %28, %20, %30 : vector<8x64x128xi1>, vector<8x64x128xf32>
      %cst_11 = arith.constant dense<0.000000e+00> : vector<8x128xf32>
      %32 = vector.multi_reduction <add>, %31, %cst_11 [1] : vector<8x64x128xf32> to vector<8x128xf32>
      %33 = arith.addf %29, %32 : vector<8x128xf32>
      %c0_12 = arith.constant 0 : index
      %c0_13 = arith.constant 0 : index
      %34 = vector.load %arg11[%c0_12, %c0_13] : memref<8x128xf32, #tpu.memory_space<vmem>>, vector<8x128xf32>
      tpu.vector_store %arg11[%c0_12, %c0_13], %33 {strides = array<i32>} : memref<8x128xf32, #tpu.memory_space<vmem>>, vector<8x128xf32>,
    } else {
    }
    %c3_i32 = arith.constant 3 : i32
    %17 = arith.cmpi eq, %arg1, %c3_i32 : i32
    %18 = arith.extui %17 : i1 to i32
    %c0_i32_4 = arith.constant 0 : i32
    %19 = arith.cmpi ne, %18, %c0_i32_4 : i32
    scf.if %19 {
      %c0 = arith.constant 0 : index
      %c0_5 = arith.constant 0 : index
      %20 = vector.load %arg11[%c0, %c0_5] : memref<8x128xf32, #tpu.memory_space<vmem>>, vector<8x128xf32>
      %c0_6 = arith.constant 0 : index
      %c0_7 = arith.constant 0 : index
      %21 = vector.load %arg5[%c0_6, %c0_7] : memref<8x1xf32, #tpu.memory_space<vmem>>, vector<8x1xf32>
      %22 = vector.broadcast %21 : vector<8x1xf32> to vector<8x128xf32>
      %23 = arith.divf %20, %22 : vector<8x128xf32>
      %c0_8 = arith.constant 0 : index
      %c0_9 = arith.constant 0 : index
      %24 = vector.load %arg6[%c0_8, %c0_9] : memref<128x128xf32, #tpu.memory_space<vmem>>, vector<128x128xf32>
      %cst = arith.constant dense<0.000000e+00> : vector<8x128xf32>
      %25 = tpu.matmul %23, %24, %cst {dimension_numbers = #tpu.dot_dimension_numbers<[1], [0], [0], [1], [0, 0, 1, 1], [], []>} : vector<8x128xf32>, vector<128x128xf32>, vector<8x128xf32> -> vector<8x128xf32>
      %c0_10 = arith.constant 0 : index
      %c0_11 = arith.constant 0 : index
      %26 = vector.load %arg7[%c0_10, %c0_11] : memref<1x128xf32, #tpu.memory_space<vmem>>, vector<1x128xf32>
      %27 = vector.broadcast %26 : vector<1x128xf32> to vector<8x128xf32>
      %28 = arith.addf %25, %27 : vector<8x128xf32>
      %cst_12 = arith.constant 0.000000e+00 : f32
      %29 = vector.broadcast %cst_12 : f32 to vector<8x128xf32>
      %30 = arith.maximumf %28, %29 : vector<8x128xf32>
      %c0_13 = arith.constant 0 : index
      %c0_14 = arith.constant 0 : index
      %31 = vector.load %arg8[%c0_13, %c0_14] : memref<128x8xf32, #tpu.memory_space<vmem>>, vector<128x8xf32>
      %cst_15 = arith.constant dense<0.000000e+00> : vector<8x8xf32>
      %32 = tpu.matmul %30, %31, %cst_15 {dimension_numbers = #tpu.dot_dimension_numbers<[1], [0], [0], [1], [0, 0, 1, 1], [], []>} : vector<8x128xf32>, vector<128x8xf32>, vector<8x8xf32> -> vector<8x8xf32>
      %c0_16 = arith.constant 0 : index
      %c0_17 = arith.constant 0 : index
      %33 = vector.load %arg9[%c0_16, %c0_17] : memref<1x8xf32, #tpu.memory_space<vmem>>, vector<1x8xf32>
      %34 = vector.broadcast %33 : vector<1x8xf32> to vector<8x8xf32>
      %35 = arith.addf %32, %34 : vector<8x8xf32>
      %c0_18 = arith.constant 0 : index
      %c0_19 = arith.constant 0 : index
      %36 = vector.load %arg10[%c0_18, %c0_19] : memref<8x8xf32, #tpu.memory_space<vmem>>, vector<8x8xf32>
      tpu.vector_store %arg10[%c0_18, %c0_19], %35 {strides = array<i32>} : memref<8x8xf32, #tpu.memory_space<vmem>>, vector<8x8xf32>,
    } else {
    }
    return
  }
  func.func @transform_0(%arg0: i32, %arg1: i32, %arg2: memref<2xi32, #tpu.memory_space<smem>>, %arg3: memref<2xi32, #tpu.memory_space<smem>>) -> (i32, i32, i32) {
    %c0_i32 = arith.constant 0 : i32
    %c0_i32_0 = arith.constant 0 : i32
    return %arg0, %arg1, %c0_i32 : i32, i32, i32
  }
  func.func @transform_1(%arg0: i32, %arg1: i32, %arg2: memref<2xi32, #tpu.memory_space<smem>>, %arg3: memref<2xi32, #tpu.memory_space<smem>>) -> (i32, i32) {
    %c0_i32 = arith.constant 0 : i32
    %c0_i32_0 = arith.constant 0 : i32
    return %arg0, %c0_i32 : i32, i32
  }
  func.func @transform_2(%arg0: i32, %arg1: i32, %arg2: memref<2xi32, #tpu.memory_space<smem>>, %arg3: memref<2xi32, #tpu.memory_space<smem>>) -> (i32, i32) {
    %c0_i32 = arith.constant 0 : i32
    %c0_i32_0 = arith.constant 0 : i32
    %c0_i32_1 = arith.constant 0 : i32
    return %c0_i32, %c0_i32_0 : i32, i32
  }
  func.func @transform_3(%arg0: i32, %arg1: i32, %arg2: memref<2xi32, #tpu.memory_space<smem>>, %arg3: memref<2xi32, #tpu.memory_space<smem>>) -> (i32, i32) {
    %c0_i32 = arith.constant 0 : i32
    %c0_i32_0 = arith.constant 0 : i32
    %c0_i32_1 = arith.constant 0 : i32
    return %c0_i32, %c0_i32_0 : i32, i32
  }
  func.func @transform_4(%arg0: i32, %arg1: i32, %arg2: memref<2xi32, #tpu.memory_space<smem>>, %arg3: memref<2xi32, #tpu.memory_space<smem>>) -> (i32, i32) {
    %c0_i32 = arith.constant 0 : i32
    %c0_i32_0 = arith.constant 0 : i32
    %c0_i32_1 = arith.constant 0 : i32
    return %c0_i32, %c0_i32_0 : i32, i32
  }
  func.func @transform_5(%arg0: i32, %arg1: i32, %arg2: memref<2xi32, #tpu.memory_space<smem>>, %arg3: memref<2xi32, #tpu.memory_space<smem>>) -> (i32, i32) {
    %c0_i32 = arith.constant 0 : i32
    %c0_i32_0 = arith.constant 0 : i32
    %c0_i32_1 = arith.constant 0 : i32
    return %c0_i32, %c0_i32_0 : i32, i32
  }
  func.func @transform_6(%arg0: i32, %arg1: i32, %arg2: memref<2xi32, #tpu.memory_space<smem>>, %arg3: memref<2xi32, #tpu.memory_space<smem>>) -> (i32, i32) {
    %c0_i32 = arith.constant 0 : i32
    %c0_i32_0 = arith.constant 0 : i32
    return %arg0, %c0_i32 : i32, i32
  }
}

</mosaic_0001>

<bundles_post_ra>
// kernel: tpu_custom_call.1
= control target key start
LH: loop header
LB: loop body
LE: loop exit
PB: predicated region body
PF: predicated region fallthrough
CT: control target
= control target key end

     0   :  { %s2638_s0 = inlined_call_operand.hbm [shape: s32[2], index: 0, kind: input, shape index: {}]   ;;  %s2639_s2 = inlined_call_operand.hbm [shape: f32[16,256,128], index: 2, kind: input, shape index: {}]   ;;  %s2640_s3 = inlined_call_operand.vmem [shape: f32[16,1], index: 3, kind: input, shape index: {}]   ;;  %s2641_s4 = inlined_call_operand.hbm [shape: f32[128,128], index: 4, kind: input, shape index: {}]   ;;  %s2642_s5 = inlined_call_operand.hbm [shape: f32[1,128], index: 5, kind: input, shape index: {}]   ;;  %s2643_s6 = inlined_call_operand.vmem [shape: f32[128,8], index: 6, kind: input, shape index: {}]   ;;  %s2644_s7 = inlined_call_operand.hbm [shape: f32[1,8], index: 7, kind: input, shape index: {}]   ;;  %s2645_s8 = inlined_call_operand.vmem [shape: f32[16,8], index: 8, kind: output, shape index: {}]   ;;  %s2646_s1 = inlined_call_operand.hbm [shape: s32[2], index: 1, kind: input, shape index: {}]  }
   0x1   :  { %2655 = sst [smem:[#allocation24_spill]] %s2643_s6  ;;  %s1685_s29 = scalar_lea.hbm %s2638_s0, 16 }
   0x2   :  { %p1686_p0 = scmp.ne.s32.totalorder %s2638_s0, %s1685_s29  ;;  %p1689_p1 = scmp.lt.u32.totalorder %s1685_s29, %s2638_s0 }
   0x4   :  { %p1691_p2 = pnand %p1689_p1, %p1686_p0 }
   0x6   :  { %1694 = shalt.err (!%p1691_p2)  }
   0x7   :  { %s1867_s12 = smov [#allocation4]   ;;  %s1695_s17 = scalar_lea.hbm %s2646_s1, 16 }
   0x8   :  { %14 = dma.hbm_to_smem %s2638_s0, 16, %s1867_s12, [#allocation3] }
   0x9   :  { %p1696_p3 = scmp.ne.s32.totalorder %s2646_s1, %s1695_s17  ;;  %p1699_p4 = scmp.lt.u32.totalorder %s1695_s17, %s2646_s1 }
   0xb   :  { %p1701_p5 = pnand %p1699_p4, %p1696_p3 }
   0xd   :  { %1704 = shalt.err (!%p1701_p5)  }
   0xe   :  { %s1868_s22 = smov [#allocation5]  }
   0xf   :  { %16 = dma.hbm_to_smem %s2646_s1, 16, %s1868_s22, [#allocation3] }
  0x10   :  { %1821 = dma.done.wait [#allocation3], 32 }
  0x11   :  { %1822 = vsyncadd [#allocation3], 4294967264 }
  0x12   :  { %18 = sfence }
  0x13   :  { %19 = vsyncpa [#allocation7], 0 }
  0x14   :  { %21 = vsyncpa [#allocation7 + $0x1], 0 }
  0x15   :  { %22 = vsyncpa [#allocation9], 0 }
  0x16   :  { %23 = vsyncpa [#allocation12], 0  ;;  %s1955_s0 = smov 0   ;;  %s1957_s25 = smov 0  }
  0x17   :  { %s1959_s26 = smov 0   ;;  %s1961_s27 = smov 0  }
  0x18   :  { %s1963_s28 = smov 0   ;;  %s1965_s29 = smov 0  }
  0x19   :  { %s1967_s1 = smov 0   ;;  %s1969_s30 = smov 0  }
  0x1a LB: > { %2656 = sst [smem:[#allocation20_spill]] %s1849_s27  ;;  %s1377_s9 = sadd.s32 4294967295, %s1865_s30   ;;  %s1865_s30 = sphi %s1969_s30, %s29_s30   ;;  %s1861_s1 = sphi %s1967_s1, %s2684_s1   ;;  %s1857_s29 = sphi %s1965_s29, %s2683_s29   ;;  %s1853_s28 = sphi %s1963_s28, %s2682_s28   ;;  %s1849_s27 = sphi %s1961_s27, %s2681_s27   ;;  %s1845_s26 = sphi %s1959_s26, %s2680_s26   ;;  %s1841_s25 = sphi %s1957_s25, %s2679_s25   ;;  %s1837_s0 = sphi %s1955_s0, %s2678_s0  }
  0x1b   : > { %s38_s10 = sadd.s32 1, %s1857_s29  ;;  %s41_s11 = sadd.s32 1, %s1861_s1 }
  0x1c   : > { %p39_p6 = scmp.ge.s32.totalorder %s38_s10, 4  ;;  %s50_s12 = sadd.s32 1, %s1845_s26 }
  0x1d   : > { %p57_p7 = scmp.ne.s32.totalorder %s1845_s26, %s1841_s25  ;;  %p58_p8 = scmp.eq.s32.totalorder %s1865_s30, 0 }
  0x1e   : > { %s2686_s10 = smov (%p39_p6, %s38_s10), 0  ;;  %s2688_s11 = smov (!%p39_p6, %s41_s11), %s1861_s1 }
  0x1f   : > { %2657 = sst [smem:[#allocation21_spill]] %s2686_s10  ;;  %s46_s13 = ssub.s32 %s1857_s29, %s2686_s10 }
  0x20   : > { %p43_p9 = scmp.ge.s32.totalorder %s2688_s11, 2  ;;  %p63_p10 = scmp.ne.s32.totalorder %s1841_s25, %s1837_s0 }
  0x21   : > { %p2006_p11 = por %p58_p8, %p57_p7  ;;  %p2010_p12 = scmp.eq.s32.totalorder %s1377_s9, 0 }
  0x22   : > { %s2690_s11 = smov (%p43_p9, %s2688_s11), 0  ;;  %p1379_p0 = scmp.ge.s32.totalorder %s1865_s30, 1 }
  0x23   : > { %s2658_s14 = scalar_select %p2006_p11, 1, 0 }
  0x24   : > { %s2659_s15 = scalar_select %p2010_p12, 1, 0 }
  0x25   : > { %2660 = sst [smem:[#allocation22_spill]] %s2690_s11  ;;  %p2018_p13 = por %p2010_p12, %p63_p10 }
  0x26   : > { %s45_s17 = ssub.s32 %s1861_s1, %s2690_s11  ;;  %p210_p1 = scmp.lt.s32.totalorder %s1865_s30, 9 }
  0x27   : > { %s2661_s16 = scalar_select %p2018_p13, 1, 0 }
  0x28   : > { %s47_s18 = sor.u32 %s46_s13, %s45_s17  ;;  %p2026_p3 = pnand %p1379_p0, %p210_p1 }
  0x29   : > { %p48_p2 = scmp.eq.s32.totalorder %s47_s18, 0  ;;  %s1869_s21 = smov [#allocation8]  }
  0x2a   : > { %s2662_s19 = scalar_select %p2026_p3, 1, 0 }
  0x2b   : > { %s2031_s20 = scalar_select %p48_p2, %s1845_s26, %s50_s12  }
  0x2c   : > { %p1580_p4 = pneg %p2026_p3  ;;  %s222_s22 = sshll.u32 %s1869_s21, 4  ;;  %s223_s22 = int_to_ptr.vmem [resolvable:$true] %s222_s22 }
  0x2d   : > { %2663 = sst [smem:[#allocation23_spill]] %s2031_s20  ;;  %s1870_s24 = smov [#allocation10]  }
  0x2e   : > { %p2037_p5 = pnand %p1580_p4, %p2010_p12  ;;  %s236_s0 = sshll.u32 %s1870_s24, 4  ;;  %s2041_s0 = int_to_ptr.vmem [resolvable:$true] %s236_s0 }
  0x2f   : > { %s1705_s12 = scalar_lea.hbm %s2641_s4, 2048 }
  0x30   : > { %p1706_p6 = scmp.ne.s32.totalorder %s2641_s4, %s1705_s12  ;;  %p2051_p7 = pneg %p2037_p5 }
  0x31   : > { %p1712_p10 = scmp.lt.u32.totalorder %s1705_s12, %s2641_s4 }
  0x32   : > { %p1708_p8 = pnand %p2051_p7, %p1706_p6 }
  0x34   : > { %p1709_p9 = pneg %p1708_p8 }
  0x36   : > { %p1714_p0 = pnand %p1712_p10, %p1709_p9 }
  0x38   : > { %1717 = shalt.err (!%p1714_p0)
}
  0x39   : > { %s1718_s9 = scalar_lea.vmem %s223_s22, 2048  ;;  %p1726_p12 = scmp.lt.s32.totalorder %s223_s22, %s223_s22 }
  0x3a   : > { %p1719_p1 = scmp.ne.s32.totalorder %s223_s22, %s1718_s9  ;;  %p1727_p13 = scmp.lt.s32.totalorder %s1718_s9, %s1718_s9 }
  0x3c   : > { %p1721_p2 = pnand %p1719_p1, %p2051_p7  ;;  %p1728_p3 = por %p1727_p13, %p1726_p12 }
  0x3e   : > { %p1722_p4 = pneg %p1721_p2 }
  0x40   : > { %p1729_p11 = pnand %p1728_p3, %p1722_p4 }
  0x42   : > { %1732 = shalt.err (!%p1729_p11)
}
  0x43   : > { %s1871_s13 = smov 128   ;;  %s1872_s17 = smov 8  }
  0x44   : > { %1583 = dma.hbm_to_vmem [thread:$0]  (!%p2037_p5), %s2641_s4, 2048, %s223_s22, [#allocation9], %s1871_s13, %s1871_s13, %s1872_s17  }
  0x45   : > { %s1733_s10 = scalar_lea.hbm %s2642_s5, 16 }
  0x46   : > { %p1734_p6 = scmp.ne.s32.totalorder %s2642_s5, %s1733_s10  ;;  %p1740_p13 = scmp.lt.u32.totalorder %s1733_s10, %s2642_s5 }
  0x48   : > { %p1736_p12 = pnand %p1734_p6, %p2051_p7 }
  0x4a   : > { %p1737_p11 = pneg %p1736_p12 }
  0x4c   : > { %p1742_p3 = pnand %p1740_p13, %p1737_p11 }
  0x4e   : > { %1745 = shalt.err (!%p1742_p3)
}
  0x4f   : > { %s1746_s22 = scalar_lea.vmem %s2041_s0, 16  ;;  %s1753_s6 = scalar_lea.vmem %s2041_s0, 32 }
  0x50   : > { %p1747_p8 = scmp.ne.s32.totalorder %s2041_s0, %s1746_s22  ;;  %p1754_p0 = scmp.lt.s32.totalorder %s2041_s0, %s2041_s0 }
  0x51   : > { %p1755_p1 = scmp.lt.s32.totalorder %s1753_s6, %s1746_s22 }
  0x52   : > { %p1749_p9 = pnand %p1747_p8, %p2051_p7 }
  0x53   : > { %p1756_p2 = por %p1755_p1, %p1754_p0 }
  0x54   : > { %p1750_p10 = pneg %p1749_p9 }
  0x56   : > { %p1757_p4 = pnand %p1756_p2, %p1750_p10 }
  0x58   : > { %1760 = shalt.err (!%p1757_p4)
}
  0x59   : > { %1586 = dma.hbm_to_vmem [thread:$0]  (!%p2037_p5), %s2642_s5, 16, %s2041_s0, [#allocation9]  }
  0x5a   : > { %s1873_s20 = smov [#allocation11]   ;;  %s1761_s12 = scalar_lea.hbm %s2644_s7, 16 }
  0x5b   : > { %s250_s13 = sshll.u32 %s1873_s20, 4  ;;  %p1762_p6 = scmp.ne.s32.totalorder %s2644_s7, %s1761_s12  ;;  %s251_s13 = int_to_ptr.vmem [resolvable:$true] %s250_s13 }
  0x5c   : > { %p1768_p13 = scmp.lt.u32.totalorder %s1761_s12, %s2644_s7 }
  0x5d   : > { %p1764_p12 = pnand %p1762_p6, %p2051_p7 }
  0x5f   : > { %p1765_p11 = pneg %p1764_p12 }
  0x61   : > { %p1770_p3 = pnand %p1768_p13, %p1765_p11 }
  0x63   : > { %1773 = shalt.err (!%p1770_p3)
}
  0x64   : > { %s1774_s0 = scalar_lea.vmem %s251_s13, 16  ;;  %s1781_s6 = scalar_lea.vmem %s251_s13, 32 }
  0x65   : > { %p1775_p8 = scmp.ne.s32.totalorder %s251_s13, %s1774_s0  ;;  %p1782_p0 = scmp.lt.s32.totalorder %s251_s13, %s251_s13 }
  0x66   : > { %p1783_p1 = scmp.lt.s32.totalorder %s1781_s6, %s1774_s0 }
  0x67   : > { %p1777_p9 = pnand %p1775_p8, %p2051_p7 }
  0x68   : > { %p1784_p2 = por %p1783_p1, %p1782_p0 }
  0x69   : > { %p1778_p10 = pneg %p1777_p9 }
  0x6b   : > { %p1785_p4 = pnand %p1784_p2, %p1778_p10 }
  0x6d   : > { %1788 = shalt.err (!%p1785_p4)
}
  0x6e   : > { %1589 = dma.hbm_to_vmem [thread:$0]  (!%p2037_p5), %s2644_s7, 16, %s251_s13, [#allocation12]  }
  0x6f   : > { %p1383_p6 = scmp.ge.s32.totalorder %s1865_s30, 8 }
  0x71   : > { %257 = sbr.rel (%p1383_p6) target bundleno = 137 (0x89), region = 32 }
  0x78   : > { %s261_s21 = sand.u32 1, %s1845_s26   ;;  %s1386_s20 = sshll.u32 %s1857_s29, 3 }
  0x79   : > { %s1384_s17 = sshll.u32 %s261_s21, 9  ;;  %s1406_s11 = sshll.u32 %s1861_s1, 8 }
  0x7a   : > { %s272_s23 = sadd.s32 %s1406_s11, %s1386_s20  ;;  %s265_s12 = scalar_lea.vmem [#allocation6], %s1384_s17 }
  0x7b   : > { %s287_s13 = sshll.u32 %s265_s12, 4  ;;  %s1388_s18 = sshll.u32 %s272_s23, 7  ;;  %s288_s13 = int_to_ptr.vmem [resolvable:$true] %s287_s13 }
  0x7c   : > { %p2666_p5 = scmp.ne.s32.totalorder %s2658_s14, 0  ;;  %s1874_s9 = smov 4096  }
  0x7d   : > { %s1875_s0 = smov 1024   ;;  %s1876_s6 = smov 8  }
  0x7e   : > { %s1565_s24 = scalar_select %p2666_p5, [#allocation0], [#allocation15] }
  0x7f   : > { %1566 = sst [smem:[#allocation14]] (%p2666_p5), %s1874_s9  ;;  %s1877_s27 = smov 128  }
  0x80   : > { %s279_s22 = sld [smem:[%s1565_s24]]   ;;  %s274_s17 = scalar_lea.hbm %s2639_s2, %s1388_s18 }
  0x81   : > { %1567 = sst [smem:[#allocation14 + $0x1]] (%p2666_p5), %s1875_s0  ;;  %s262_s12 = scalar_lea.sflag [#allocation7], %s261_s21 }
  0x82   : > { %1568 = sst [smem:[#allocation14 + $0x2]] (%p2666_p5), %s1876_s6  ;;  %s1878_s24 = smov [#allocation13]  }
  0x83   : > { %1569 = sst [smem:[#allocation14 + $0x3]] (%p2666_p5), %s1877_s27 }
  0x84   : > { %1570 = sst [smem:[#allocation14 + $0x4]] (%p2666_p5), %s1877_s27 }
  0x85   : > { %1571 = sst [smem:[#allocation14 + $0x5]] (%p2666_p5), %s1876_s6 }
  0x86   : > { %s1389_s11 = sshll.u32 %s279_s22, 26 }
  0x87   : > { %s1390_s23 = sadd.s32 134217728, %s1389_s11 }
  0x88   : > { %1572 = dma.general (%p2666_p5), %s274_s17, 8192, %s288_s13, %s262_s12, %s1878_s24, [#allocation14], %s1390_s23, 0  }
  0x89 PF: > { %p2667_p7 = scmp.ne.s32.totalorder %s2662_s19, 0 }
  0x8a   : > { %s321_s9 = sand.u32 (!%p2667_p7), 1, %s1841_s25   ;;  %p2668_p12 = scmp.ne.s32.totalorder (!%p2667_p7), %s2661_s16, 0 }
  0x8b   : > { %319 = sbr.rel (%p2667_p7) target bundleno = 1023 (0x3ff), region = 44  ;;  %s1392_s0 = sshll.u32 (!%p2667_p7), %s321_s9, 9 }
  0x8c   : > { %s322_s10 = scalar_lea.sflag (!%p2667_p7), [#allocation7], %s321_s9  ;;  %s2135_s18 = scalar_lea.vmem (!%p2667_p7), [#allocation6], %s1392_s0 }
  0x92   : > { %1824 = dma.done.wait (%p2668_p12), %s322_s10, 8192  }
  0x93   : > { %1826 = vsyncadd (%p2668_p12), %s322_s10, 4294959104  ;;  %p2669_p11 = scmp.ne.s32.totalorder %s2659_s15, 0 }
  0x95   : > { %1828 = dma.done.wait (%p2669_p11), [#allocation9], 2064  }
  0x96   : > { %1830 = vsyncadd (%p2669_p11), [#allocation9], 4294965232 }
  0x97   : > { %1832 = dma.done.wait (%p2669_p11), [#allocation12], 16  }
  0x98   : > { %1834 = vsyncadd (%p2669_p11), [#allocation12], 4294967280  ;;  %p371_p13 = scmp.lt.s32.totalorder %s1853_s28, 1  ;;  %s2670_s20 = sld [smem:[#allocation20_spill]] }
  0x9a   : > { %s372_s14 = scalar_select %p371_p13, %s1853_s28, 1 }
  0x9c   : > { %s1396_s19 = sshll.u32 %s372_s14, 3 }
  0x9d   : > { %s2154_s13 = scalar_lea.vmem %s2640_s3, %s1396_s19  ;;  %s2159_s27 = scalar_lea.vmem %s2645_s8, %s1396_s19 }
  0x9e   : > { %p1398_p3 = scmp.ne.s32.totalorder %s2670_s20, 0 }
  0x9f   : > { %v1879_v0 = vmov (!%p1398_p3), 0.0  }
  0xa0   : > { %382 = sbr.rel (%p1398_p3) target bundleno = 167 (0xa7), region = 64  ;;  %383 = vst [vmem:[#allocation2] sm:$0xff] (!%p1398_p3), %v1879_v0 }
  0xa7 PF: > { %s2671_s15 = sld [smem:[#allocation20_spill]] }
  0xa8   : > { %s386_s11 = sld [smem:[#allocation4 + %s1853_s28]] }
  0xa9   : > { %s2168_s12 = sld [smem:[#allocation5 + %s1853_s28]] }
  0xad   : > { %s2163_s17 = sshll.u32 %s2671_s15, 6 }
  0xae   : > { %s385_s23 = sadd.s32 64, %s2163_s17 }
  0xaf   : > { %p2170_p8 = scmp.gt.s32.totalorder %s385_s23, %s386_s11 }
  0xb0   : > { %v393_v1 = vld [vmem:[%s2135_s18] sm:$0xff] (!%p2170_p8)  ;;  %v394_v2 = vld [vmem:[%s2135_s18 + $0x8] sm:$0xff] (!%p2170_p8)  ;;  %v395_v3 = vld [vmem:[%s2135_s18 + $0x10] sm:$0xff] (!%p2170_p8)  ;;  %vm569_vm0 = vcmask (!%p2170_p8), 1041409   ;;  %vm571_vm1 = vcmask (!%p2170_p8), 1042434   ;;  %vm573_vm2 = vcmask (!%p2170_p8), 1043459  }
  0xb1   : > { %391 = sbr.rel (%p2170_p8) target bundleno = 224 (0xe0), region = 68  ;;  %v457_v4 = vadd.f32 (!%p2170_p8), %v394_v2, %v393_v1  ;;  %v396_v5 = vld [vmem:[%s2135_s18 + $0x18] sm:$0xff] (!%p2170_p8)  ;;  %v401_v6 = vld [vmem:[%s2135_s18 + $0x40] sm:$0xff] (!%p2170_p8)  ;;  %v402_v7 = vld [vmem:[%s2135_s18 + $0x48] sm:$0xff] (!%p2170_p8)  ;;  %vm575_vm3 = vcmask (!%p2170_p8), 1044484   ;;  %vm577_vm4 = vcmask (!%p2170_p8), 1045509  }
  0xb2   : > { %v403_v8 = vld [vmem:[%s2135_s18 + $0x50] sm:$0xff] (!%p2170_p8)  ;;  %v397_v10 = vld [vmem:[%s2135_s18 + $0x20] sm:$0xff] (!%p2170_p8)  ;;  %v470_v11 = vadd.f32 (!%p2170_p8), %v402_v7, %v401_v6  ;;  %v404_v12 = vld [vmem:[%s2135_s18 + $0x58] sm:$0xff] (!%p2170_p8)  ;;  %vm579_vm5 = vcmask (!%p2170_p8), 1046534   ;;  %vm581_vm6 = vcmask (!%p2170_p8), 1047559  }
  0xb3   : > { %v458_v9 = vadd.f32 (!%p2170_p8), %v457_v4, %v395_v3  ;;  %v409_v13 = vld [vmem:[%s2135_s18 + $0x80] sm:$0xff] (!%p2170_p8)  ;;  %v398_v15 = vld [vmem:[%s2135_s18 + $0x28] sm:$0xff] (!%p2170_p8)  ;;  %v411_v17 = vld [vmem:[%s2135_s18 + $0x90] sm:$0xff] (!%p2170_p8) }
  0xb4   : > { %v410_v16 = vld [vmem:[%s2135_s18 + $0x88] sm:$0xff] (!%p2170_p8)  ;;  %v471_v18 = vadd.f32 (!%p2170_p8), %v470_v11, %v403_v8  ;;  %v399_v19 = vld [vmem:[%s2135_s18 + $0x30] sm:$0xff] (!%p2170_p8)  ;;  %v405_v20 = vld [vmem:[%s2135_s18 + $0x60] sm:$0xff] (!%p2170_p8) }
  0xb5   : > { %v459_v14 = vadd.f32 (!%p2170_p8), %v458_v9, %v396_v5  ;;  %v483_v22 = vadd.f32 (!%p2170_p8), %v410_v16, %v409_v13  ;;  %v412_v23 = vld [vmem:[%s2135_s18 + $0x98] sm:$0xff] (!%p2170_p8)  ;;  %v417_v24 = vld [vmem:[%s2135_s18 + $0xc0] sm:$0xff] (!%p2170_p8)  ;;  %v418_v25 = vld [vmem:[%s2135_s18 + $0xc8] sm:$0xff] (!%p2170_p8) }
  0xb6   : > { %v472_v26 = vadd.f32 (!%p2170_p8), %v471_v18, %v404_v12  ;;  %v400_v27 = vld [vmem:[%s2135_s18 + $0x38] sm:$0xff] (!%p2170_p8)  ;;  %v406_v28 = vld [vmem:[%s2135_s18 + $0x68] sm:$0xff] (!%p2170_p8)  ;;  %v419_v29 = vld [vmem:[%s2135_s18 + $0xd0] sm:$0xff] (!%p2170_p8)  ;;  %v496_v32 = vadd.f32 (!%p2170_p8), %v418_v25, %v417_v24 }
  0xb7   : > { %v460_v21 = vadd.f32 (!%p2170_p8), %v459_v14, %v397_v10  ;;  %v484_v31 = vadd.f32 (!%p2170_p8), %v483_v22, %v411_v17  ;;  %v407_v33 = vld [vmem:[%s2135_s18 + $0x70] sm:$0xff] (!%p2170_p8)  ;;  %v413_v34 = vld [vmem:[%s2135_s18 + $0xa0] sm:$0xff] (!%p2170_p8)  ;;  %v420_v35 = vld [vmem:[%s2135_s18 + $0xd8] sm:$0xff] (!%p2170_p8) }
  0xb8   : > { %v473_v36 = vadd.f32 %v472_v26, %v405_v20  ;;  %v425_v37 = vld [vmem:[%s2135_s18 + $0x100] sm:$0xff]  ;;  %v426_v38 = vld [vmem:[%s2135_s18 + $0x108] sm:$0xff]  ;;  %v427_v39 = vld [vmem:[%s2135_s18 + $0x110] sm:$0xff]  ;;  %v497_v42 = vadd.f32 %v496_v32, %v419_v29 }
  0xb9   : > { %v461_v30 = vadd.f32 %v460_v21, %v398_v15  ;;  %v485_v41 = vadd.f32 %v484_v31, %v412_v23  ;;  %v408_v43 = vld [vmem:[%s2135_s18 + $0x78] sm:$0xff]  ;;  %v414_v44 = vld [vmem:[%s2135_s18 + $0xa8] sm:$0xff]  ;;  %v421_v45 = vld [vmem:[%s2135_s18 + $0xe0] sm:$0xff]  ;;  %v509_v47 = vadd.f32 %v426_v38, %v425_v37 }
  0xba   : > { %v474_v46 = vadd.f32 %v473_v36, %v406_v28  ;;  %v415_v48 = vld [vmem:[%s2135_s18 + $0xb0] sm:$0xff]  ;;  %v428_v49 = vld [vmem:[%s2135_s18 + $0x118] sm:$0xff]  ;;  %v433_v50 = vld [vmem:[%s2135_s18 + $0x140] sm:$0xff]  ;;  %v498_v53 = vadd.f32 %v497_v42, %v420_v35 }
  0xbb   : > { %v462_v40 = vadd.f32 %v461_v30, %v399_v19  ;;  %v486_v52 = vadd.f32 %v485_v41, %v413_v34  ;;  %v422_v54 = vld [vmem:[%s2135_s18 + $0xe8] sm:$0xff]  ;;  %v435_v56 = vld [vmem:[%s2135_s18 + $0x150] sm:$0xff]  ;;  %v510_v58 = vadd.f32 %v509_v47, %v427_v39  ;;  %v416_v59 = vld [vmem:[%s2135_s18 + $0xb8] sm:$0xff] }
  0xbc   : > { %v434_v55 = vld [vmem:[%s2135_s18 + $0x148] sm:$0xff]  ;;  %v475_v57 = vadd.f32 %v474_v46, %v407_v33  ;;  %v423_v60 = vld [vmem:[%s2135_s18 + $0xf0] sm:$0xff]  ;;  %v429_v61 = vld [vmem:[%s2135_s18 + $0x120] sm:$0xff]  ;;  %v499_v0 = vadd.f32 %v498_v53, %v421_v45 }
  0xbd   : > { %v463_v51 = vadd.f32 %v462_v40, %v400_v27  ;;  %v487_v63 = vadd.f32 %v486_v52, %v414_v44  ;;  %v522_v1 = vadd.f32 %v434_v55, %v433_v50  ;;  %v436_v2 = vld [vmem:[%s2135_s18 + $0x158] sm:$0xff]  ;;  %v441_v3 = vld [vmem:[%s2135_s18 + $0x180] sm:$0xff]  ;;  %v442_v4 = vld [vmem:[%s2135_s18 + $0x188] sm:$0xff]  ;;  %v511_v6 = vadd.f32 %v510_v58, %v428_v49 }
  0xbe   : > { %v476_v5 = vadd.f32 %v475_v57, %v408_v43  ;;  %v424_v7 = vld [vmem:[%s2135_s18 + $0xf8] sm:$0xff]  ;;  %v430_v8 = vld [vmem:[%s2135_s18 + $0x128] sm:$0xff]  ;;  %v443_v9 = vld [vmem:[%s2135_s18 + $0x190] sm:$0xff]  ;;  %v500_v12 = vadd.f32 %v499_v0, %v422_v54  ;;  %v535_v19 = vadd.f32 %v442_v4, %v441_v3 }
  0xbf   : > { %v464_v62 = vrot.slane %v463_v51, 4  ;;  %v488_v11 = vadd.f32 %v487_v63, %v415_v48  ;;  %v523_v13 = vadd.f32 %v522_v1, %v435_v56  ;;  %v431_v14 = vld [vmem:[%s2135_s18 + $0x130] sm:$0xff]  ;;  %v437_v15 = vld [vmem:[%s2135_s18 + $0x160] sm:$0xff]  ;;  %v444_v16 = vld [vmem:[%s2135_s18 + $0x198] sm:$0xff]  ;;  %v512_v18 = vadd.f32 %v511_v6, %v429_v61 }
  0xc0   : > { %v477_v17 = vrot.slane %v476_v5, 4  ;;  %v449_v20 = vld [vmem:[%s2135_s18 + $0x1c0] sm:$0xff]  ;;  %v450_v21 = vld [vmem:[%s2135_s18 + $0x1c8] sm:$0xff]  ;;  %v451_v22 = vld [vmem:[%s2135_s18 + $0x1d0] sm:$0xff]  ;;  %v501_v25 = vadd.f32 %v500_v12, %v423_v60  ;;  %v536_v30 = vadd.f32 %v535_v19, %v443_v9 }
  0xc1   : > { %v465_v10 = vadd.f32 %v464_v62, %v463_v51  ;;  %v489_v24 = vadd.f32 %v488_v11, %v416_v59  ;;  %v524_v26 = vadd.f32 %v523_v13, %v436_v2  ;;  %v438_v27 = vld [vmem:[%s2135_s18 + $0x168] sm:$0xff]  ;;  %v513_v29 = vadd.f32 %v512_v18, %v430_v8  ;;  %v432_v32 = vld [vmem:[%s2135_s18 + $0x138] sm:$0xff]  ;;  %v445_v33 = vld [vmem:[%s2135_s18 + $0x1a0] sm:$0xff] }
  0xc2   : > { %v478_v28 = vadd.f32 %v477_v17, %v476_v5  ;;  %v548_v31 = vadd.f32 %v450_v21, %v449_v20  ;;  %v452_v34 = vld [vmem:[%s2135_s18 + $0x1d8] sm:$0xff]  ;;  %v502_v37 = vadd.f32 %v501_v25, %v424_v7  ;;  %v439_v39 = vld [vmem:[%s2135_s18 + $0x170] sm:$0xff]  ;;  %v537_v42 = vadd.f32 %v536_v30, %v444_v16  ;;  %v446_v44 = vld [vmem:[%s2135_s18 + $0x1a8] sm:$0xff] }
  0xc3   : > { %v466_v23 = vrot.slane %v465_v10, 2  ;;  %v490_v36 = vrot.slane %v489_v24, 4  ;;  %v525_v38 = vadd.f32 %v524_v26, %v437_v15  ;;  %v514_v41 = vadd.f32 %v513_v29, %v431_v14  ;;  %v453_v45 = vld [vmem:[%s2135_s18 + $0x1e0] sm:$0xff]  ;;  %v440_v50 = vld [vmem:[%s2135_s18 + $0x178] sm:$0xff]  ;;  %v447_v55 = vld [vmem:[%s2135_s18 + $0x1b0] sm:$0xff] }
  0xc4   : > { %v479_v40 = vrot.slane %v478_v28, 2  ;;  %v549_v43 = vadd.f32 %v548_v31, %v451_v22  ;;  %v503_v48 = vrot.slane %v502_v37, 4  ;;  %v538_v53 = vadd.f32 %v537_v42, %v445_v33  ;;  %v454_v56 = vld [vmem:[%s2135_s18 + $0x1e8] sm:$0xff]  ;;  %v448_v1 = vld [vmem:[%s2135_s18 + $0x1b8] sm:$0xff]  ;;  %v455_v2 = vld [vmem:[%s2135_s18 + $0x1f0] sm:$0xff] }
  0xc5   : > { %v467_v35 = vadd.f32 %v466_v23, %v465_v10  ;;  %v491_v47 = vadd.f32 %v490_v36, %v489_v24  ;;  %v526_v49 = vadd.f32 %v525_v38, %v438_v27  ;;  %v515_v52 = vadd.f32 %v514_v41, %v432_v32  ;;  %v456_v10 = vld [vmem:[%s2135_s18 + $0x1f8] sm:$0xff] }
  0xc6   : > { %v480_v51 = vadd.f32 %v479_v40, %v478_v28  ;;  %v550_v54 = vadd.f32 %v549_v43, %v452_v34  ;;  %v504_v59 = vadd.f32 %v503_v48, %v502_v37  ;;  %v539_v63 = vadd.f32 %v538_v53, %v446_v44 }
  0xc7   : > { %v468_v46 = vrot.slane %v467_v35, 1  ;;  %v492_v58 = vrot.slane %v491_v47, 2  ;;  %v527_v60 = vadd.f32 %v526_v49, %v439_v39  ;;  %v516_v62 = vrot.slane %v515_v52, 4 }
  0xc8   : > { %v481_v61 = vrot.slane %v480_v51, 1  ;;  %v551_v0 = vadd.f32 %v550_v54, %v453_v45  ;;  %v505_v4 = vrot.slane %v504_v59, 2  ;;  %v540_v8 = vadd.f32 %v539_v63, %v447_v55  ;;  %v392_v45 = vld [vmem:[#allocation2] sm:$0xff] }
  0xc9   : > { %v469_v57 = vadd.f32 %v468_v46, %v467_v35  ;;  %v493_v3 = vadd.f32 %v492_v58, %v491_v47  ;;  %v528_v5 = vadd.f32 %v527_v60, %v440_v50  ;;  %v517_v7 = vadd.f32 %v516_v62, %v515_v52 }
  0xca   : > { %v482_v6 = vadd.f32 %v481_v61, %v480_v51  ;;  %v552_v9 = vadd.f32 %v551_v0, %v454_v56  ;;  %v506_v12 = vadd.f32 %v505_v4, %v504_v59  ;;  %v541_v15 = vadd.f32 %v540_v8, %v448_v1 }
  0xcb   : > { %v494_v11 = vrot.slane %v493_v3, 1  ;;  %v529_v13 = vrot.slane %v528_v5, 4  ;;  %v518_v14 = vrot.slane %v517_v7, 2 }
  0xcc   : > { %v553_v16 = vadd.f32 %v552_v9, %v455_v2  ;;  %v570_v17 = vsel %vm569_vm0, %v482_v6, %v469_v57  ;;  %v507_v19 = vrot.slane %v506_v12, 1  ;;  %v542_v22 = vrot.slane %v541_v15, 4 }
  0xcd   : > { %v495_v18 = vadd.f32 %v494_v11, %v493_v3  ;;  %v530_v20 = vadd.f32 %v529_v13, %v528_v5  ;;  %v519_v21 = vadd.f32 %v518_v14, %v517_v7 }
  0xce   : > { %v554_v23 = vadd.f32 %v553_v16, %v456_v10  ;;  %v508_v24 = vadd.f32 %v507_v19, %v506_v12  ;;  %v543_v28 = vadd.f32 %v542_v22, %v541_v15 }
  0xcf   : > { %v531_v25 = vrot.slane %v530_v20, 2  ;;  %v572_v26 = vsel %vm571_vm1, %v495_v18, %v570_v17  ;;  %v520_v27 = vrot.slane %v519_v21, 1 }
  0xd0   : > { %v555_v29 = vrot.slane %v554_v23, 4  ;;  %v574_v31 = vsel %vm573_vm2, %v508_v24, %v572_v26  ;;  %v544_v33 = vrot.slane %v543_v28, 2 }
  0xd1   : > { %v532_v30 = vadd.f32 %v531_v25, %v530_v20  ;;  %v521_v32 = vadd.f32 %v520_v27, %v519_v21 }
  0xd2   : > { %v556_v34 = vadd.f32 %v555_v29, %v554_v23  ;;  %v545_v36 = vadd.f32 %v544_v33, %v543_v28 }
  0xd3   : > { %v533_v35 = vrot.slane %v532_v30, 1  ;;  %v576_v38 = vsel %vm575_vm3, %v521_v32, %v574_v31 }
  0xd4   : > { %v557_v37 = vrot.slane %v556_v34, 2  ;;  %v546_v40 = vrot.slane %v545_v36, 1 }
  0xd5   : > { %v534_v39 = vadd.f32 %v533_v35, %v532_v30 }
  0xd6   : > { %v558_v41 = vadd.f32 %v557_v37, %v556_v34  ;;  %v547_v43 = vadd.f32 %v546_v40, %v545_v36 }
  0xd7   : > { %v578_v42 = vsel %vm577_vm4, %v534_v39, %v576_v38 }
  0xd8   : > { %v559_v44 = vrot.slane %v558_v41, 1  ;;  %v580_v47 = vsel %vm579_vm5, %v547_v43, %v578_v42 }
  0xda   : > { %v560_v46 = vadd.f32 %v559_v44, %v558_v41 }
  0xdc   : > { %v582_v48 = vsel %vm581_vm6, %v560_v46, %v580_v47 }
  0xdd   : > { %v584_v49 = vadd.f32 %v582_v48, %v392_v45 }
  0xdf   : > { %585 = vst [vmem:[#allocation2] sm:$0xff] %v584_v49 }
  0xe0 PF: > { %p587_p9 = scmp.lt.s32.totalorder %s2163_s17, %s2168_s12 }
  0xe2   : > { %p588_p10 = pnand %p2170_p8, %p587_p9 }
  0xe3   : > { %v656_v50 = vlaneseq (!%p588_p10)  ;;  %v1880_v51 = vmov (!%p588_p10), 0   ;;  %v1881_v52 = vmov (!%p588_p10), 1966171168   ;;  %v682_v55 = vld [vmem:[%s2154_s13] sm:$0xff] (!%p588_p10)  ;;  %v665_v18 = vstv (!%p588_p10), %s2163_s17  ;;  %v592_v31 = vld [vmem:[%s2135_s18] sm:$0xff] (!%p588_p10)  ;;  %v593_v32 = vld [vmem:[%s2135_s18 + $0x8] sm:$0xff] (!%p588_p10) }
  0xe4   : > { %591 = sbr.rel (%p588_p10) target bundleno = 442 (0x1ba), region = 72  ;;  %1679 = vset.pattern.permute.xlu0 (!%p588_p10), %v1880_v51  ;;  %v686_v53 = vunpack.c.l.s4 (!%p588_p10), %v1881_v52  ;;  %1680 = vset.pattern.permute.xlu1 (!%p588_p10), %v1880_v51  ;;  %v684_v56 = vcombine.high (!%p588_p10), %v682_v55, %v682_v55  ;;  %v594_v35 = vld [vmem:[%s2135_s18 + $0x10] sm:$0xff] (!%p588_p10)  ;;  %v608_v45 = vld [vmem:[%s2135_s18 + $0x80] sm:$0xff] (!%p588_p10)  ;;  %v609_v46 = vld [vmem:[%s2135_s18 + $0x88] sm:$0xff] (!%p588_p10) }
  0xe5   : > { %v657_v54 = vshrl.u32 (!%p588_p10), %v656_v50, 7  ;;  %v595_v47 = vld [vmem:[%s2135_s18 + $0x18] sm:$0xff] (!%p588_p10)  ;;  %v596_v49 = vld [vmem:[%s2135_s18 + $0x20] sm:$0xff] (!%p588_p10)  ;;  %v610_v51 = vld [vmem:[%s2135_s18 + $0x90] sm:$0xff] (!%p588_p10) }
  0xe6   : > { %v687_v57 = vunpack.c.0.s8 (!%p588_p10), %v686_v53 }
  0xe7   : > { %v735_v61 = vsub.s32 (!%p588_p10), 0, %v657_v54  ;;  %v658_v16 = vadd.s32 (!%p588_p10), 8, %v657_v54  ;;  %v659_v17 = vadd.s32 (!%p588_p10), 16, %v657_v54  ;;  %v660_v19 = vadd.s32 (!%p588_p10), 24, %v657_v54 }
  0xe8   : > { %v690_v58 = vsub.s32 (!%p588_p10), %v687_v57, %v657_v54  ;;  %v666_v20 = vadd.s32 (!%p588_p10), %v665_v18, %v657_v54  ;;  %v661_v23 = vadd.s32 (!%p588_p10), 32, %v657_v54  ;;  %v662_v24 = vadd.s32 (!%p588_p10), 40, %v657_v54 }
  0xe9   : > { %v667_v21 = vadd.s32 (!%p588_p10), %v665_v18, %v658_v16  ;;  %v668_v22 = vadd.s32 (!%p588_p10), %v665_v18, %v659_v17  ;;  %v669_v25 = vadd.s32 (!%p588_p10), %v665_v18, %v660_v19  ;;  %v663_v33 = vadd.s32 (!%p588_p10), 48, %v657_v54  ;;  %v633_v19 = vld [vmem:[%s2135_s18 + $0x148] sm:$0xff] (!%p588_p10) }
  0xea   : > { %v691_v59 = vrot.slane (!%p588_p10), %v682_v55, %v690_v58  ;;  %v698_v60 = vrot.slane (!%p588_p10), %v684_v56, %v690_v58  ;;  %v2246_v26 = vcvt.s32.f32 (!%p588_p10), %v666_v20  ;;  %v670_v29 = vadd.s32 (!%p588_p10), %v665_v18, %v661_v23  ;;  %v599_v23 = vld [vmem:[%s2135_s18 + $0x38] sm:$0xff] (!%p588_p10) }
  0xeb   : > { %v2248_v27 = vcvt.s32.f32 %v667_v21  ;;  %v2250_v28 = vcvt.s32.f32 %v668_v22  ;;  %v671_v34 = vadd.s32 %v665_v18, %v662_v24  ;;  %v2257_v36 = vcvt.s32.f32 %v669_v25  ;;  %v604_v21 = vld [vmem:[%s2135_s18 + $0x60] sm:$0xff] }
  0xec   : > { %v707_v62 = vrot.slane %v691_v59, %v690_v58  ;;  %v699_v63 = vcombine.high %v691_v59, %v691_v59  ;;  %v700_v0 = vcombine.high %v698_v60, %v698_v60  ;;  %v714_v7 = vrot.slane %v698_v60, %v690_v58  ;;  %v600_v60 = vld [vmem:[%s2135_s18 + $0x40] sm:$0xff] }
  0xed   : > { %v2265_v37 = vcvt.s32.f32 %v670_v29  ;;  %v664_v41 = vadd.s32 56, %v657_v54  ;;  %v672_v42 = vadd.s32 %v665_v18, %v663_v33  ;;  %v2269_v43 = vcvt.s32.f32 %v671_v34 }
  0xee   : > { %v736_v1 = vrot.slane %v707_v62, %v735_v61  ;;  %v729_v2 = vcombine.high %v707_v62, %v707_v62  ;;  %v721_v3 = vrot.slane %v699_v63, %v690_v58  ;;  %v728_v4 = vrot.slane %v700_v0, %v690_v58  ;;  %v597_v62 = vld [vmem:[%s2135_s18 + $0x28] sm:$0xff] }
  0xef   : > { %v752_v10 = vrot.slane %v714_v7, %v735_v61  ;;  %v730_v11 = vcombine.high %v714_v7, %v714_v7  ;;  %v673_v55 = vadd.s32 %v665_v18, %v664_v41  ;;  %v2288_v57 = vcvt.s32.f32 %v672_v42  ;;  %v632_v18 = vld [vmem:[%s2135_s18 + $0x140] sm:$0xff] }
  0xf0   : > { %766 = vperm.xlu0 %1679, %v736_v1   ;;  %v744_v5 = vrot.slane %v729_v2, %v735_v61  ;;  %v740_v6 = vrot.slane %v721_v3, %v735_v61  ;;  %v756_v8 = vrot.slane %v728_v4, %v735_v61  ;;  %v731_v9 = vcombine.high %v721_v3, %v721_v3  ;;  %v611_v2 = vld [vmem:[%s2135_s18 + $0x98] sm:$0xff] }
  0xf1   : > { %v732_v13 = vcombine.high %v728_v4, %v728_v4  ;;  %v760_v14 = vrot.slane %v730_v11, %v735_v61 }
  0xf2   : > { %774 = vperm.xlu1 %1680, %v744_v5   ;;  %v748_v12 = vrot.slane %v731_v9, %v735_v61 }
  0xf3   : > { %v764_v15 = vrot.slane %v732_v13, %v735_v61  ;;  %v601_v61 = vld [vmem:[%s2135_s18 + $0x48] sm:$0xff]  ;;  %v612_v13 = vld [vmem:[%s2135_s18 + $0xa0] sm:$0xff] }
  0xf4   : > { %770 = vperm.xlu0 %1679, %v740_v6   ;;  %v2305_v6 = vcvt.s32.f32 %v673_v55 }
  0xf6   : > { %786 = vperm.xlu1 %1680, %v756_v8   ;;  %v602_v8 = vld [vmem:[%s2135_s18 + $0x50] sm:$0xff] }
  0xf8   : > { %782 = vperm.xlu0 %1679, %v752_v10   ;;  %v598_v10 = vld [vmem:[%s2135_s18 + $0x30] sm:$0xff] }
  0xfa   : > { %778 = vperm.xlu1 %1680, %v748_v12  }
  0xfc   : > { %790 = vperm.xlu0 %1679, %v760_v14  }
  0xfe   : > { %794 = vperm.xlu1 %1680, %v764_v15   ;;  %v603_v15 = vld [vmem:[%s2135_s18 + $0x58] sm:$0xff] }
 0x16f   : > { %v2252_v30 = vpop.permute.xlu0 %766 }
 0x170   : > { %vm797_vm7 = vcmp.lt.f32.partialorder %v2246_v26, %v2252_v30  ;;  %vm798_vm8 = vcmp.lt.f32.partialorder %v2248_v27, %v2252_v30  ;;  %vm799_vm9 = vcmp.lt.f32.partialorder %v2250_v28, %v2252_v30  ;;  %vm800_vm10 = vcmp.lt.f32.partialorder %v2257_v36, %v2252_v30 }
 0x171   : > { %v2267_v38 = vpop.permute.xlu1 %774  ;;  %v862_v39 = vsel %vm797_vm7, %v592_v31, 0.0  ;;  %v863_v40 = vsel %vm798_vm8, %v593_v32, 0.0  ;;  %v864_v44 = vsel %vm799_vm9, %v594_v35, 0.0  ;;  %vm801_vm13 = vcmp.lt.f32.partialorder %v2265_v37, %v2252_v30  ;;  %v613_v31 = vld [vmem:[%s2135_s18 + $0xa8] sm:$0xff] }
 0x172   : > { %v926_v48 = vadd.f32 %v863_v40, %v862_v39  ;;  %vm813_vm11 = vcmp.lt.f32.partialorder %v2246_v26, %v2267_v38  ;;  %vm814_vm12 = vcmp.lt.f32.partialorder %v2248_v27, %v2267_v38  ;;  %vm815_vm14 = vcmp.lt.f32.partialorder %v2250_v28, %v2267_v38  ;;  %v605_v39 = vld [vmem:[%s2135_s18 + $0x68] sm:$0xff] }
 0x173   : > { %v878_v52 = vsel %vm813_vm11, %v608_v45, 0.0  ;;  %v879_v53 = vsel %vm814_vm12, %v609_v46, 0.0  ;;  %v2286_v54 = vpop.permute.xlu0 %770  ;;  %v865_v56 = vsel %vm800_vm10, %v595_v47, 0.0  ;;  %vm802_vm15 = vcmp.lt.f32.partialorder %v2269_v43, %v2252_v30 }
 0x174   : > { %v927_v50 = vadd.f32 %v926_v48, %v864_v44  ;;  %v952_v59 = vadd.f32 %v879_v53, %v878_v52  ;;  %v866_v63 = vsel %vm801_vm13, %v596_v49, 0.0  ;;  %v880_v0 = vsel %vm815_vm14, %v610_v51, 0.0  ;;  %v634_v44 = vld [vmem:[%s2135_s18 + $0x150] sm:$0xff]  ;;  %v615_v49 = vld [vmem:[%s2135_s18 + $0xb8] sm:$0xff] }
 0x175   : > { %vm805_vm0 = vcmp.lt.f32.partialorder %v2246_v26, %v2286_v54  ;;  %vm806_vm1 = vcmp.lt.f32.partialorder %v2248_v27, %v2286_v54  ;;  %vm816_vm2 = vcmp.lt.f32.partialorder %v2257_v36, %v2267_v38  ;;  %v867_v7 = vsel %vm802_vm15, %v597_v62, 0.0  ;;  %v2313_v9 = vpop.permute.xlu1 %786  ;;  %v614_v48 = vld [vmem:[%s2135_s18 + $0xb0] sm:$0xff] }
 0x176   : > { %v928_v58 = vadd.f32 %v927_v50, %v865_v56  ;;  %v953_v3 = vadd.f32 %v952_v59, %v880_v0  ;;  %v870_v4 = vsel %vm805_vm0, %v600_v60, 0.0  ;;  %v871_v5 = vsel %vm806_vm1, %v601_v61, 0.0  ;;  %v606_v51 = vld [vmem:[%s2135_s18 + $0x70] sm:$0xff]  ;;  %v624_v56 = vld [vmem:[%s2135_s18 + $0x100] sm:$0xff]  ;;  %v635_v59 = vld [vmem:[%s2135_s18 + $0x158] sm:$0xff] }
 0x177   : > { %vm807_vm3 = vcmp.lt.f32.partialorder %v2250_v28, %v2286_v54  ;;  %vm803_vm4 = vcmp.lt.f32.partialorder %v2288_v57, %v2252_v30  ;;  %v881_v12 = vsel %vm816_vm2, %v611_v2, 0.0  ;;  %vm817_vm5 = vcmp.lt.f32.partialorder %v2265_v37, %v2267_v38  ;;  %v2354_v45 = vpop.permute.xlu0 %782  ;;  %v636_v2 = vld [vmem:[%s2135_s18 + $0x160] sm:$0xff] }
 0x178   : > { %v929_v1 = vadd.f32 %v928_v58, %v866_v63  ;;  %v954_v14 = vadd.f32 %v953_v3, %v881_v12  ;;  %vm808_vm6 = vcmp.lt.f32.partialorder %v2257_v36, %v2286_v54  ;;  %v939_v16 = vadd.f32 %v871_v5, %v870_v4  ;;  %v625_v58 = vld [vmem:[%s2135_s18 + $0x108] sm:$0xff]  ;;  %v607_v63 = vld [vmem:[%s2135_s18 + $0x78] sm:$0xff] }
 0x179   : > { %v872_v17 = vsel %vm807_vm3, %v602_v8, 0.0  ;;  %vm837_vm7 = vcmp.lt.f32.partialorder %v2246_v26, %v2313_v9  ;;  %vm838_vm8 = vcmp.lt.f32.partialorder %v2248_v27, %v2313_v9  ;;  %vm804_vm9 = vcmp.lt.f32.partialorder %v2305_v6, %v2252_v30  ;;  %v637_v12 = vld [vmem:[%s2135_s18 + $0x168] sm:$0xff] }
 0x17a   : > { %v930_v11 = vadd.f32 %v929_v1, %v867_v7  ;;  %v868_v20 = vsel %vm803_vm4, %v598_v10, 0.0  ;;  %vm809_vm10 = vcmp.lt.f32.partialorder %v2265_v37, %v2286_v54  ;;  %v940_v22 = vadd.f32 %v939_v16, %v872_v17 }
 0x17b   : > { %vm818_vm11 = vcmp.lt.f32.partialorder %v2269_v43, %v2267_v38  ;;  %v882_v25 = vsel %vm817_vm5, %v612_v13, 0.0  ;;  %v873_v29 = vsel %vm808_vm6, %v603_v15, 0.0  ;;  %v902_v34 = vsel %vm837_vm7, %v632_v18, 0.0  ;;  %v638_v13 = vld [vmem:[%s2135_s18 + $0x170] sm:$0xff]  ;;  %v627_v15 = vld [vmem:[%s2135_s18 + $0x118] sm:$0xff] }
 0x17c   : > { %v931_v24 = vadd.f32 %v930_v11, %v868_v20  ;;  %v955_v32 = vadd.f32 %v954_v14, %v882_v25  ;;  %v941_v33 = vadd.f32 %v940_v22, %v873_v29  ;;  %v903_v35 = vsel %vm838_vm8, %v633_v19, 0.0  ;;  %v616_v19 = vld [vmem:[%s2135_s18 + $0xc0] sm:$0xff]  ;;  %v617_v20 = vld [vmem:[%s2135_s18 + $0xc8] sm:$0xff] }
 0x17d   : > { %vm810_vm12 = vcmp.lt.f32.partialorder %v2269_v43, %v2286_v54  ;;  %v874_v40 = vsel %vm809_vm10, %v604_v21, 0.0  ;;  %v869_v41 = vsel %vm804_vm9, %v599_v23, 0.0  ;;  %vm839_vm13 = vcmp.lt.f32.partialorder %v2250_v28, %v2313_v9  ;;  %v639_v23 = vld [vmem:[%s2135_s18 + $0x178] sm:$0xff] }
 0x17e   : > { %v942_v42 = vadd.f32 %v941_v33, %v874_v40  ;;  %vm819_vm14 = vcmp.lt.f32.partialorder %v2288_v57, %v2267_v38  ;;  %vm820_vm15 = vcmp.lt.f32.partialorder %v2305_v6, %v2267_v38  ;;  %v883_v30 = vsel %vm818_vm11, %v613_v31, 0.0  ;;  %v626_v38 = vld [vmem:[%s2135_s18 + $0x110] sm:$0xff] }
 0x17f   : > { %v991_v46 = vadd.f32 %v903_v35, %v902_v34  ;;  %v932_v47 = vadd.f32 %v931_v24, %v869_v41  ;;  %v956_v50 = vadd.f32 %v955_v32, %v883_v30  ;;  %vm811_vm0 = vcmp.lt.f32.partialorder %v2288_v57, %v2286_v54  ;;  %v628_v24 = vld [vmem:[%s2135_s18 + $0x120] sm:$0xff]  ;;  %v629_v34 = vld [vmem:[%s2135_s18 + $0x128] sm:$0xff]  ;;  %v618_v30 = vld [vmem:[%s2135_s18 + $0xd0] sm:$0xff] }
 0x180   : > { %v875_v52 = vsel %vm810_vm12, %v605_v39, 0.0  ;;  %v904_v55 = vsel %vm839_vm13, %v634_v44, 0.0  ;;  %vm829_vm1 = vcmp.lt.f32.partialorder %v2246_v26, %v2354_v45  ;;  %vm830_vm2 = vcmp.lt.f32.partialorder %v2248_v27, %v2354_v45 }
 0x181   : > { %v943_v53 = vadd.f32 %v942_v42, %v875_v52  ;;  %vm840_vm3 = vcmp.lt.f32.partialorder %v2257_v36, %v2313_v9  ;;  %v992_v60 = vadd.f32 %v991_v46, %v904_v55  ;;  %v884_v61 = vsel %vm819_vm14, %v614_v48, 0.0  ;;  %v630_v42 = vld [vmem:[%s2135_s18 + $0x130] sm:$0xff]  ;;  %v619_v52 = vld [vmem:[%s2135_s18 + $0xd8] sm:$0xff] }
 0x182   : > { %v885_v62 = vsel %vm820_vm15, %v615_v49, 0.0  ;;  %vm812_vm4 = vcmp.lt.f32.partialorder %v2305_v6, %v2286_v54  ;;  %v876_v0 = vsel %vm811_vm0, %v606_v51, 0.0  ;;  %v933_v1 = vrot.slane %v932_v47, 4  ;;  %v2395_v54 = vpop.permute.xlu1 %778  ;;  %v631_v55 = vld [vmem:[%s2135_s18 + $0x138] sm:$0xff] }
 0x183   : > { %vm841_vm5 = vcmp.lt.f32.partialorder %v2265_v37, %v2313_v9  ;;  %v894_v3 = vsel %vm829_vm1, %v624_v56, 0.0  ;;  %v895_v4 = vsel %vm830_vm2, %v625_v58, 0.0  ;;  %v957_v5 = vadd.f32 %v956_v50, %v884_v61  ;;  %v2442_v50 = vpop.permute.xlu0 %790 }
 0x184   : > { %v944_v7 = vadd.f32 %v943_v53, %v876_v0  ;;  %v905_v8 = vsel %vm840_vm3, %v635_v59, 0.0  ;;  %vm831_vm6 = vcmp.lt.f32.partialorder %v2250_v28, %v2354_v45  ;;  %v877_v10 = vsel %vm812_vm4, %v607_v63, 0.0  ;;  %v641_v63 = vld [vmem:[%s2135_s18 + $0x188] sm:$0xff] }
 0x185   : > { %vm842_vm7 = vcmp.lt.f32.partialorder %v2269_v43, %v2313_v9  ;;  %vm843_vm8 = vcmp.lt.f32.partialorder %v2288_v57, %v2313_v9  ;;  %v993_v11 = vadd.f32 %v992_v60, %v905_v8  ;;  %vm844_vm9 = vcmp.lt.f32.partialorder %v2305_v6, %v2313_v9  ;;  %v620_v60 = vld [vmem:[%s2135_s18 + $0xe0] sm:$0xff] }
 0x186   : > { %v906_v14 = vsel %vm841_vm5, %v636_v2, 0.0  ;;  %vm832_vm10 = vcmp.lt.f32.partialorder %v2257_v36, %v2354_v45  ;;  %v978_v16 = vadd.f32 %v895_v4, %v894_v3  ;;  %v934_v17 = vadd.f32 %v933_v1, %v932_v47 }
 0x187   : > { %v896_v18 = vsel %vm831_vm6, %v626_v38, 0.0  ;;  %vm821_vm11 = vcmp.lt.f32.partialorder %v2246_v26, %v2395_v54  ;;  %vm822_vm12 = vcmp.lt.f32.partialorder %v2248_v27, %v2395_v54  ;;  %v958_v21 = vadd.f32 %v957_v5, %v885_v62  ;;  %v640_v62 = vld [vmem:[%s2135_s18 + $0x180] sm:$0xff] }
 0x188   : > { %v945_v22 = vadd.f32 %v944_v7, %v877_v10  ;;  %vm833_vm13 = vcmp.lt.f32.partialorder %v2265_v37, %v2354_v45  ;;  %v979_v25 = vadd.f32 %v978_v16, %v896_v18  ;;  %v907_v29 = vsel %vm842_vm7, %v637_v12, 0.0  ;;  %v621_v7 = vld [vmem:[%s2135_s18 + $0xe8] sm:$0xff]  ;;  %v642_v16 = vld [vmem:[%s2135_s18 + $0x190] sm:$0xff] }
 0x189   : > { %v908_v31 = vsel %vm843_vm8, %v638_v13, 0.0  ;;  %v994_v32 = vadd.f32 %v993_v11, %v906_v14  ;;  %v897_v33 = vsel %vm832_vm10, %v627_v15, 0.0  ;;  %vm834_vm14 = vcmp.lt.f32.partialorder %v2269_v43, %v2354_v45  ;;  %v622_v14 = vld [vmem:[%s2135_s18 + $0xf0] sm:$0xff] }
 0x18a   : > { %v980_v35 = vadd.f32 %v979_v25, %v897_v33  ;;  %v886_v39 = vsel %vm821_vm11, %v616_v19, 0.0  ;;  %v887_v40 = vsel %vm822_vm12, %v617_v20, 0.0  ;;  %v909_v41 = vsel %vm844_vm9, %v639_v23, 0.0  ;;  %v643_v23 = vld [vmem:[%s2135_s18 + $0x198] sm:$0xff] }
 0x18b   : > { %vm835_vm15 = vcmp.lt.f32.partialorder %v2288_v57, %v2354_v45  ;;  %v898_v44 = vsel %vm833_vm13, %v628_v24, 0.0  ;;  %vm823_vm0 = vcmp.lt.f32.partialorder %v2250_v28, %v2395_v54  ;;  %v935_v46 = vrot.slane %v934_v17, 2 }
 0x18c   : > { %v959_v47 = vrot.slane %v958_v21, 4  ;;  %v946_v48 = vrot.slane %v945_v22, 4  ;;  %v981_v49 = vadd.f32 %v980_v35, %v898_v44  ;;  %v995_v9 = vadd.f32 %v994_v32, %v907_v29  ;;  %v649_v32 = vld [vmem:[%s2135_s18 + $0x1c8] sm:$0xff]  ;;  %v644_v35 = vld [vmem:[%s2135_s18 + $0x1a0] sm:$0xff] }
 0x18d   : > { %v899_v51 = vsel %vm834_vm14, %v629_v34, 0.0  ;;  %vm824_vm1 = vcmp.lt.f32.partialorder %v2257_v36, %v2395_v54  ;;  %v965_v53 = vadd.f32 %v887_v40, %v886_v39  ;;  %vm836_vm2 = vcmp.lt.f32.partialorder %v2305_v6, %v2354_v45  ;;  %v2485_v45 = vpop.permute.xlu1 %794 }
 0x18e   : > { %v900_v56 = vsel %vm835_vm15, %v630_v42, 0.0  ;;  %v982_v58 = vadd.f32 %v981_v49, %v899_v51  ;;  %v888_v59 = vsel %vm823_vm0, %v618_v30, 0.0  ;;  %vm825_vm3 = vcmp.lt.f32.partialorder %v2265_v37, %v2395_v54  ;;  %v645_v42 = vld [vmem:[%s2135_s18 + $0x1a8] sm:$0xff] }
 0x18f   : > { %v966_v61 = vadd.f32 %v965_v53, %v888_v59  ;;  %vm845_vm4 = vcmp.lt.f32.partialorder %v2246_v26, %v2442_v50  ;;  %vm846_vm5 = vcmp.lt.f32.partialorder %v2248_v27, %v2442_v50  ;;  %v960_v0 = vadd.f32 %v959_v47, %v958_v21  ;;  %v623_v21 = vld [vmem:[%s2135_s18 + $0xf8] sm:$0xff] }
 0x190   : > { %v947_v1 = vadd.f32 %v946_v48, %v945_v22  ;;  %v983_v2 = vadd.f32 %v982_v58, %v900_v56  ;;  %v889_v3 = vsel %vm824_vm1, %v619_v52, 0.0  ;;  %v2468_v4 = vadd.f32 %v935_v46, %v934_v17  ;;  %v646_v52 = vld [vmem:[%s2135_s18 + $0x1b0] sm:$0xff]  ;;  %v651_v58 = vld [vmem:[%s2135_s18 + $0x1d8] sm:$0xff] }
 0x191   : > { %v996_v5 = vadd.f32 %v995_v9, %v908_v31  ;;  %vm826_vm6 = vcmp.lt.f32.partialorder %v2269_v43, %v2395_v54  ;;  %v967_v8 = vadd.f32 %v966_v61, %v889_v3  ;;  %v901_v38 = vsel %vm836_vm2, %v631_v55, 0.0  ;;  %v648_v31 = vld [vmem:[%s2135_s18 + $0x1c0] sm:$0xff]  ;;  %v647_v61 = vld [vmem:[%s2135_s18 + $0x1b8] sm:$0xff] }
 0x192   : > { %v890_v10 = vsel %vm825_vm3, %v620_v60, 0.0  ;;  %v910_v11 = vsel %vm845_vm4, %v640_v62, 0.0  ;;  %v911_v12 = vsel %vm846_vm5, %v641_v63, 0.0  ;;  %v984_v13 = vadd.f32 %v983_v2, %v901_v38  ;;  %v652_v2 = vld [vmem:[%s2135_s18 + $0x1e0] sm:$0xff] }
 0x193   : > { %vm827_vm7 = vcmp.lt.f32.partialorder %v2288_v57, %v2395_v54  ;;  %v968_v15 = vadd.f32 %v967_v8, %v890_v10  ;;  %vm847_vm8 = vcmp.lt.f32.partialorder %v2250_v28, %v2442_v50  ;;  %v961_v17 = vrot.slane %v960_v0, 2  ;;  %v653_v10 = vld [vmem:[%s2135_s18 + $0x1e8] sm:$0xff] }
 0x194   : > { %v948_v18 = vrot.slane %v947_v1, 2  ;;  %vm828_vm9 = vcmp.lt.f32.partialorder %v2305_v6, %v2395_v54  ;;  %v891_v19 = vsel %vm826_vm6, %v621_v7, 0.0  ;;  %v997_v20 = vadd.f32 %v996_v5, %v909_v41  ;;  %v650_v54 = vld [vmem:[%s2135_s18 + $0x1d0] sm:$0xff] }
 0x195   : > { %v969_v22 = vadd.f32 %v968_v15, %v891_v19  ;;  %vm848_vm10 = vcmp.lt.f32.partialorder %v2257_v36, %v2442_v50  ;;  %v1004_v24 = vadd.f32 %v911_v12, %v910_v11  ;;  %v892_v25 = vsel %vm827_vm7, %v622_v14, 0.0 }
 0x196   : > { %v912_v29 = vsel %vm847_vm8, %v642_v16, 0.0  ;;  %vm853_vm11 = vcmp.lt.f32.partialorder %v2246_v26, %v2485_v45  ;;  %vm854_vm12 = vcmp.lt.f32.partialorder %v2248_v27, %v2485_v45  ;;  %v985_v33 = vrot.slane %v984_v13, 4  ;;  %v654_v16 = vld [vmem:[%s2135_s18 + $0x1f0] sm:$0xff] }
 0x197   : > { %v970_v34 = vadd.f32 %v969_v22, %v892_v25  ;;  %vm849_vm13 = vcmp.lt.f32.partialorder %v2265_v37, %v2442_v50  ;;  %v1005_v39 = vadd.f32 %v1004_v24, %v912_v29  ;;  %v949_v40 = vadd.f32 %v948_v18, %v947_v1 }
 0x198   : > { %v893_v41 = vsel %vm828_vm9, %v623_v21, 0.0  ;;  %vm850_vm14 = vcmp.lt.f32.partialorder %v2269_v43, %v2442_v50  ;;  %v913_v26 = vsel %vm848_vm10, %v643_v23, 0.0  ;;  %v918_v30 = vsel %vm853_vm11, %v648_v31, 0.0 }
 0x199   : > { %v971_v27 = vadd.f32 %v970_v34, %v893_v41  ;;  %v1006_v44 = vadd.f32 %v1005_v39, %v913_v26  ;;  %v919_v46 = vsel %vm854_vm12, %v649_v32, 0.0  ;;  %v962_v47 = vadd.f32 %v961_v17, %v960_v0 }
 0x19a   : > { %v998_v48 = vrot.slane %v997_v20, 4  ;;  %v914_v49 = vsel %vm849_vm13, %v644_v35, 0.0  ;;  %vm855_vm15 = vcmp.lt.f32.partialorder %v2250_v28, %v2485_v45  ;;  %vm1038_vm0 = vcmask 1041409  }
 0x19b   : > { %v986_v9 = vadd.f32 %v985_v33, %v984_v13  ;;  %v972_v51 = vrot.slane %v971_v27, 4  ;;  %vm851_vm1 = vcmp.lt.f32.partialorder %v2288_v57, %v2442_v50  ;;  %v1007_v53 = vadd.f32 %v1006_v44, %v914_v49 }
 0x19c   : > { %v950_v55 = vrot.slane %v949_v40, 1  ;;  %v915_v56 = vsel %vm850_vm14, %v645_v42, 0.0  ;;  %vm856_vm2 = vcmp.lt.f32.partialorder %v2257_v36, %v2485_v45  ;;  %v1017_v59 = vadd.f32 %v919_v46, %v918_v30 }
 0x19d   : > { %v973_v60 = vadd.f32 %v972_v51, %v971_v27  ;;  %vm852_vm3 = vcmp.lt.f32.partialorder %v2305_v6, %v2442_v50  ;;  %v1008_v62 = vadd.f32 %v1007_v53, %v915_v56  ;;  %v920_v63 = vsel %vm855_vm15, %v650_v54, 0.0 }
 0x19e   : > { %v999_v0 = vadd.f32 %v998_v48, %v997_v20  ;;  %v916_v1 = vsel %vm851_vm1, %v646_v52, 0.0  ;;  %vm857_vm4 = vcmp.lt.f32.partialorder %v2265_v37, %v2485_v45  ;;  %v1018_v3 = vadd.f32 %v1017_v59, %v920_v63  ;;  %v861_v52 = vld [vmem:[#allocation2] sm:$0xff] }
 0x19f   : > { %v987_v36 = vrot.slane %v986_v9, 2  ;;  %v974_v5 = vrot.slane %v973_v60, 2  ;;  %v1009_v7 = vadd.f32 %v1008_v62, %v916_v1  ;;  %v921_v8 = vsel %vm856_vm2, %v651_v58, 0.0 }
 0x1a0   : > { %v937_v38 = vrot.slane %v2468_v4, 1  ;;  %v917_v50 = vsel %vm852_vm3, %v647_v61, 0.0  ;;  %vm858_vm5 = vcmp.lt.f32.partialorder %v2269_v43, %v2485_v45  ;;  %v1019_v28 = vadd.f32 %v1018_v3, %v921_v8  ;;  %v655_v43 = vld [vmem:[%s2135_s18 + $0x1f8] sm:$0xff] }
 0x1a1   : > { %v963_v11 = vrot.slane %v962_v47, 1  ;;  %v975_v12 = vadd.f32 %v974_v5, %v973_v60  ;;  %v1010_v13 = vadd.f32 %v1009_v7, %v917_v50  ;;  %v922_v14 = vsel %vm857_vm4, %v652_v2, 0.0 }
 0x1a2   : > { %v951_v37 = vadd.f32 %v950_v55, %v949_v40  ;;  %v1000_v15 = vrot.slane %v999_v0, 2  ;;  %vm859_vm6 = vcmp.lt.f32.partialorder %v2288_v57, %v2485_v45  ;;  %v1020_v17 = vadd.f32 %v1019_v28, %v922_v14 }
 0x1a3   : > { %v988_v18 = vadd.f32 %v987_v36, %v986_v9  ;;  %v976_v19 = vrot.slane %v975_v12, 1  ;;  %v1011_v20 = vrot.slane %v1010_v13, 4  ;;  %v923_v21 = vsel %vm858_vm5, %v653_v10, 0.0 }
 0x1a4   : > { %v938_v22 = vadd.f32 %v937_v38, %v2468_v4  ;;  %vm860_vm7 = vcmp.lt.f32.partialorder %v2305_v6, %v2485_v45  ;;  %v1021_v23 = vadd.f32 %v1020_v17, %v923_v21  ;;  %vm1040_vm8 = vcmask 1042434  }
 0x1a5   : > { %vm1042_vm9 = vcmask 1043459   ;;  %v1012_v24 = vadd.f32 %v1011_v20, %v1010_v13  ;;  %v924_v25 = vsel %vm859_vm6, %v654_v16, 0.0  ;;  %v1001_v31 = vadd.f32 %v1000_v15, %v999_v0 }
 0x1a6   : > { %v1039_v29 = vsel %vm1038_vm0, %v951_v37, %v938_v22  ;;  %v977_v57 = vadd.f32 %v976_v19, %v975_v12  ;;  %v1022_v32 = vadd.f32 %v1021_v23, %v924_v25  ;;  %v964_v33 = vadd.f32 %v963_v11, %v962_v47 }
 0x1a7   : > { %v989_v34 = vrot.slane %v988_v18, 1  ;;  %v1013_v35 = vrot.slane %v1012_v24, 2  ;;  %v925_v39 = vsel %vm860_vm7, %v655_v43, 0.0  ;;  %v1002_v26 = vrot.slane %v1001_v31, 1 }
 0x1a8   : > { %v1023_v40 = vadd.f32 %v1022_v32, %v925_v39  ;;  %v1041_v4 = vsel %vm1040_vm8, %v964_v33, %v1039_v29  ;;  %vm1044_vm10 = vcmask 1044484   ;;  %vm1046_vm11 = vcmask 1045509  }
 0x1a9   : > { %v1014_v41 = vadd.f32 %v1013_v35, %v1012_v24  ;;  %v1043_v27 = vsel %vm1042_vm9, %v977_v57, %v1041_v4  ;;  %v990_v45 = vadd.f32 %v989_v34, %v988_v18  ;;  %v1003_v46 = vadd.f32 %v1002_v26, %v1001_v31 }
 0x1aa   : > { %v1024_v6 = vrot.slane %v1023_v40, 4  ;;  %vm1048_vm12 = vcmask 1046534   ;;  %vm1050_vm13 = vcmask 1047559  }
 0x1ab   : > { %v1015_v42 = vrot.slane %v1014_v41, 1  ;;  %v1045_v30 = vsel %vm1044_vm10, %v990_v45, %v1043_v27 }
 0x1ac   : > { %v1025_v44 = vadd.f32 %v1024_v6, %v1023_v40  ;;  %v1047_v47 = vsel %vm1046_vm11, %v1003_v46, %v1045_v30 }
 0x1ad   : > { %v1016_v49 = vadd.f32 %v1015_v42, %v1014_v41 }
 0x1ae   : > { %v1026_v48 = vrot.slane %v1025_v44, 2 }
 0x1af   : > { %v1049_v51 = vsel %vm1048_vm12, %v1016_v49, %v1047_v47 }
 0x1b0   : > { %v1027_v54 = vadd.f32 %v1026_v48, %v1025_v44 }
 0x1b2   : > { %v1028_v9 = vrot.slane %v1027_v54, 1 }
 0x1b4   : > { %v1029_v53 = vadd.f32 %v1028_v9, %v1027_v54 }
 0x1b6   : > { %v1051_v55 = vsel %vm1050_vm13, %v1029_v53, %v1049_v51 }
 0x1b7   : > { %v1053_v56 = vadd.f32 %v1051_v55, %v861_v52 }
 0x1b9   : > { %1054 = vst [vmem:[#allocation2] sm:$0xff] %v1053_v56 }
 0x1ba PF: > { %s2673_s28 = sld [smem:[#allocation20_spill]] }
 0x1c0   : > { %p1401_p0 = scmp.ne.s32.totalorder %s2673_s28, 3 }
 0x1c1   : > { %v1060_v58 = vld [vmem:[%s2154_s13] sm:$0xff] (!%p1401_p0)  ;;  %v1068_v59 = vld [vmem:[#allocation8] sm:$0xff] (!%p1401_p0)  ;;  %v1069_v60 = vld [vmem:[#allocation8 + $0x8] sm:$0xff] (!%p1401_p0)  ;;  %v1882_v61 = vmov (!%p1401_p0), 0   ;;  %v1883_v62 = vmov (!%p1401_p0), 0.0|0.0   ;;  %vm1884_vm14 = vmmov (!%p1401_p0), 0  }
 0x1c2   : > { %1058 = sbr.rel (%p1401_p0) target bundleno = 1023 (0x3ff), region = 76  ;;  %1682 = vset.pattern.permute.xlu0 (!%p1401_p0), %v1882_v61  ;;  %1511 = vmatprep.subr.bf16.mxu0 (!%p1401_p0), %v1883_v62  ;;  %v1512_v63 = vpack.c.bf16 (!%p1401_p0), %v1069_v60, %v1068_v59  ;;  %v1070_v0 = vld [vmem:[#allocation8 + $0x10] sm:$0xff] (!%p1401_p0)  ;;  %v1071_v1 = vld [vmem:[#allocation8 + $0x18] sm:$0xff] (!%p1401_p0)  ;;  %v1885_v3 = vmov (!%p1401_p0), 0.0   ;;  %v1072_v36 = vld [vmem:[#allocation8 + $0x20] sm:$0xff] (!%p1401_p0)  ;;  %s2674_s10 = sld [smem:[#allocation24_spill]] (!%p1401_p0) }
 0x1c3   : > { %1063 = vperm.xlu0 (!%p1401_p0), %1682, %v1060_v58   ;;  %1535 = vmatprep.subr.bf16.mxu1 (!%p1401_p0), %v1883_v62  ;;  %v1515_v2 = vpack.c.bf16 (!%p1401_p0), %v1071_v1, %v1070_v0  ;;  %v1073_v5 = vld [vmem:[#allocation8 + $0x28] sm:$0xff] (!%p1401_p0)  ;;  %v1074_v8 = vld [vmem:[#allocation8 + $0x30] sm:$0xff] (!%p1401_p0)  ;;  %v1075_v38 = vld [vmem:[#allocation8 + $0x38] sm:$0xff] (!%p1401_p0)  ;;  %vm1255_vm15 = vcmask (!%p1401_p0), 64512  }
 0x1c4   : > { %1513 = vmatpush3.bf16.msra.mxu0 (!%p1401_p0), %v1512_v63  ;;  %1473 = vmatprep.mubr.msk.f32.mxu0 (!%p1401_p0), %vm1884_vm14, %v1885_v3  ;;  %v1518_v7 = vpack.c.bf16 (!%p1401_p0), %v1073_v5, %v1072_v36  ;;  %v1521_v50 = vpack.c.bf16 (!%p1401_p0), %v1075_v38, %v1074_v8  ;;  %v1076_v10 = vld [vmem:[#allocation8 + $0x40] sm:$0xff] (!%p1401_p0)  ;;  %v1077_v28 = vld [vmem:[#allocation8 + $0x48] sm:$0xff] (!%p1401_p0)  ;;  %v1078_v37 = vld [vmem:[#allocation8 + $0x50] sm:$0xff] (!%p1401_p0) }
 0x1c5   : > { %1514 = vmatprep.subr.bf16.mxu0 (!%p1401_p0), %v1883_v62  ;;  %1508 = vmatprep.mubr.msk.f32.mxu1 (!%p1401_p0), %vm1884_vm14, %v1885_v3  ;;  %v1524_v11 = vpack.c.bf16 (!%p1401_p0), %v1077_v28, %v1076_v10  ;;  %v1079_v15 = vld [vmem:[#allocation8 + $0x58] sm:$0xff] (!%p1401_p0)  ;;  %v1080_v22 = vld [vmem:[#allocation8 + $0x60] sm:$0xff] (!%p1401_p0)  ;;  %v1081_v43 = vld [vmem:[#allocation8 + $0x68] sm:$0xff] (!%p1401_p0) }
 0x1c6   : > { %v1527_v19 = vpack.c.bf16 (!%p1401_p0), %v1079_v15, %v1078_v37  ;;  %v1530_v24 = vpack.c.bf16 (!%p1401_p0), %v1081_v43, %v1080_v22  ;;  %v1082_v31 = vld [vmem:[#allocation8 + $0x70] sm:$0xff] (!%p1401_p0)  ;;  %v1083_v57 = vld [vmem:[#allocation8 + $0x78] sm:$0xff] (!%p1401_p0)  ;;  %v1402_v47 = vld [vmem:[#allocation10] ss:$0 sm:$0xff] (!%p1401_p0) }
 0x1c7   : > { %v1533_v33 = vpack.c.bf16 (!%p1401_p0), %v1083_v57, %v1082_v31  ;;  %v1059_v42 = vld [vmem:[#allocation2] sm:$0xff] (!%p1401_p0)  ;;  %v1403_v53 = vld [vmem:[#allocation11] ss:$0 sm:$0xff] (!%p1401_p0) }
 0x1c8   : > { %1516 = vmatpush3.bf16.msra.mxu0 (!%p1401_p0), %v1515_v2  ;;  %v1162_v12 = vld [vmem:[%s2674_s10] sm:$0xff] (!%p1401_p0)  ;;  %v1163_v13 = vld [vmem:[%s2674_s10 + $0x8] sm:$0xff] (!%p1401_p0)  ;;  %v1164_v14 = vld [vmem:[%s2674_s10 + $0x10] sm:$0xff] (!%p1401_p0) }
 0x1c9   : > { %1517 = vmatprep.subr.bf16.mxu0 %v1883_v62  ;;  %v1536_v16 = vpack.c.bf16 %v1163_v13, %v1162_v12  ;;  %v1165_v17 = vld [vmem:[%s2674_s10 + $0x18] sm:$0xff]  ;;  %v1166_v20 = vld [vmem:[%s2674_s10 + $0x20] sm:$0xff]  ;;  %v1167_v21 = vld [vmem:[%s2674_s10 + $0x28] sm:$0xff] }
 0x1ca   : > { %v1539_v18 = vpack.c.bf16 %v1165_v17, %v1164_v14  ;;  %v1542_v23 = vpack.c.bf16 %v1167_v21, %v1166_v20  ;;  %v1168_v25 = vld [vmem:[%s2674_s10 + $0x30] sm:$0xff]  ;;  %v1169_v29 = vld [vmem:[%s2674_s10 + $0x38] sm:$0xff]  ;;  %v1170_v34 = vld [vmem:[%s2674_s10 + $0x40] sm:$0xff] }
 0x1cb   : > { %1537 = vmatpush3.bf16.msra.mxu1 %v1536_v16  ;;  %v1545_v32 = vpack.c.bf16 %v1169_v29, %v1168_v25  ;;  %v1171_v35 = vld [vmem:[%s2674_s10 + $0x48] sm:$0xff]  ;;  %v1172_v40 = vld [vmem:[%s2674_s10 + $0x50] sm:$0xff]  ;;  %v1173_v4 = vld [vmem:[%s2674_s10 + $0x58] sm:$0xff] }
 0x1cc   : > { %1519 = vmatpush3.bf16.msra.mxu0 %v1518_v7  ;;  %1538 = vmatprep.subr.bf16.mxu1 %v1883_v62  ;;  %v1548_v39 = vpack.c.bf16 %v1171_v35, %v1170_v34  ;;  %v1551_v41 = vpack.c.bf16 %v1173_v4, %v1172_v40  ;;  %v1174_v26 = vld [vmem:[%s2674_s10 + $0x60] sm:$0xff]  ;;  %v1175_v27 = vld [vmem:[%s2674_s10 + $0x68] sm:$0xff]  ;;  %v1176_v46 = vld [vmem:[%s2674_s10 + $0x70] sm:$0xff] }
 0x1cd   : > { %1520 = vmatprep.subr.bf16.mxu0 %v1883_v62  ;;  %v1554_v6 = vpack.c.bf16 %v1175_v27, %v1174_v26  ;;  %v1177_v48 = vld [vmem:[%s2674_s10 + $0x78] sm:$0xff] }
 0x1ce   : > { %v1557_v49 = vpack.c.bf16 %v1177_v48, %v1176_v46 }
 0x1cf   : > { %1540 = vmatpush3.bf16.msra.mxu1 %v1539_v18 }
 0x1d0   : > { %1522 = vmatpush3.bf16.msra.mxu0 %v1521_v50  ;;  %1541 = vmatprep.subr.bf16.mxu1 %v1883_v62 }
 0x1d1   : > { %1523 = vmatprep.subr.bf16.mxu0 %v1883_v62 }
 0x1d3   : > { %1543 = vmatpush3.bf16.msra.mxu1 %v1542_v23 }
 0x1d4   : > { %1525 = vmatpush3.bf16.msra.mxu0 %v1524_v11  ;;  %1544 = vmatprep.subr.bf16.mxu1 %v1883_v62 }
 0x1d5   : > { %1526 = vmatprep.subr.bf16.mxu0 %v1883_v62 }
 0x1d7   : > { %1546 = vmatpush3.bf16.msra.mxu1 %v1545_v32 }
 0x1d8   : > { %1528 = vmatpush3.bf16.msra.mxu0 %v1527_v19  ;;  %1547 = vmatprep.subr.bf16.mxu1 %v1883_v62 }
 0x1d9   : > { %1529 = vmatprep.subr.bf16.mxu0 %v1883_v62 }
 0x1db   : > { %1549 = vmatpush3.bf16.msra.mxu1 %v1548_v39 }
 0x1dc   : > { %1531 = vmatpush3.bf16.msra.mxu0 %v1530_v24  ;;  %1550 = vmatprep.subr.bf16.mxu1 %v1883_v62 }
 0x1dd   : > { %1532 = vmatprep.subr.bf16.mxu0 %v1883_v62 }
 0x1df   : > { %1552 = vmatpush3.bf16.msra.mxu1 %v1551_v41 }
 0x1e0   : > { %1534 = vmatpush3.bf16.msra.mxu0 %v1533_v33  ;;  %1553 = vmatprep.subr.bf16.mxu1 %v1883_v62 }
 0x1e3   : > { %1555 = vmatpush3.bf16.msra.mxu1 %v1554_v6 }
 0x1e4   : > { %1556 = vmatprep.subr.bf16.mxu1 %v1883_v62 }
 0x1e7   : > { %1558 = vmatpush3.bf16.msra.mxu1 %v1557_v49 }
 0x242   : > { %v1064_v45 = vpop.permute.xlu0 %1063 }
 0x243   : > { %1683 = vrcp.f32 %v1064_v45 }
 0x24d   : > { %v1684_v44 = vpop.eup %1683 }
 0x24e   : > { %v1067_v30 = vmul.f32 %v1684_v44, %v1059_v42 }
 0x250   : > { %1474 = vmatmul.mubr.f32.vlgmr.msra.gmra.mrb[0].mxu0 %v1067_v30 }
 0x323   : > { %v1157_v54 = vpop.f32.mrb[0].mxu0 }
 0x324   : > { %v1158_v9 = vadd.f32 %v1402_v47, %v1157_v54  ;;  %v1475_v51 = vpop.f32.mrb[1].mxu0 }
 0x326   : > { %v1161_v52 = vmax.f32 %v1158_v9, 0.0 }
 0x328   : > { %1509 = vmatmul.mubr.f32.vlgmr.msra.gmra.mrb[0].mxu1 %v1161_v52 }
 0x3fb   : > { %v1251_v55 = vpop.f32.mrb[0].mxu1 }
 0x3fc   : > { %v1252_v56 = vadd.f32 %v1403_v53, %v1251_v55  ;;  %v1510_v58 = vpop.f32.mrb[1].mxu1 }
 0x3fe   : > { %1256 = vst.msk [vmem:[%s2159_s27] sm:$0xff] %vm1255_vm15, %v1252_v56 }
 0x3ff PF: > { %s29_s30 = sadd.s32 1, %s1865_s30   ;;  %s2675_s23 = sld [smem:[#allocation23_spill]] }
 0x400   : > { %p26_p1 = scmp.ge.s32.totalorder %s29_s30, 10   ;;  %s2676_s12 = sld [smem:[#allocation21_spill]] }
 0x401   : > { %s2677_s24 = sld [smem:[#allocation22_spill]]  ;;  %s2678_s0 = smov %s1841_s25 }
 0x402   : > { %s2679_s25 = smov %s1845_s26  ;;  %s2681_s27 = smov %s1857_s29 }
 0x403   : > { %s2682_s28 = smov %s1861_s1  ;;  %28 = sbr.rel (!%p26_p1) target bundleno = 26 (0x1a), region = 120 }
 0x405   : > { %s2680_s26 = smov %s2675_s23 }
 0x406   : > { %s2683_s29 = smov %s2676_s12 }
 0x407   : > { %s2684_s1 = smov %s2677_s24 }
 0x40a   :  { %1276 = vsyncpa [#allocation7], 1 }
 0x40b   :  { %1278 = vsyncpa [#allocation7 + $0x1], 1 }
 0x40c   :  { %1279 = vsyncpa [#allocation9], 1 }
 0x40d   :  { %1280 = vsyncpa [#allocation12], 1 }

</bundles_post_ra>
